<compile_context>
chip_gen: v5e
topology: v5e:2x2
jax: 0.10.0
libtpu: 0.0.40
codegen_flags: <defaults>
</compile_context>

<pallas_src>
import jax
import jax.numpy as jnp
import numpy as np
from jax.experimental import pallas as pl
from jax.experimental.pallas import tpu as pltpu


def _decode_lstm_kernel(
    # scalar prefetch
    x_sref,       # (B,)   int32 token ids, SMEM
    # inputs
    emb_hbm,      # (V, E) embedding table, stays in HBM (pl.ANY)
    ctx_ref,      # (B, H) context vector           (fetched once)
    h_ref,        # (B, H) previous hidden state    (fetched once)
    c_ref,        # (B, H) previous cell state      (fetched once)
    wg_ref,       # (E+2H, 4H) fused [W_ih; W_hh]^T (fetched once)
    b_ref,        # (1, 4H) folded bias b_ih + b_hh (fetched once)
    wfc_ref,      # (H, TILE_V) fc weight tile      (tiled over grid, dbl-buffered)
    bfc_ref,      # (1, TILE_V) fc bias tile        (tiled over grid)
    # outputs
    logits_ref,   # (B, TILE_V)
    h_out_ref,    # (B, H)
    c_out_ref,    # (B, H)
    # scratch
    emb_buf,      # (B, E)     gathered embedding rows (compute dtype)
    inp_buf,      # (B, E+2H)  fused LSTM input  (compute dtype)
    h_scr,        # (B, H)     new hidden state in compute dtype, reused per fc tile
    sem,          # (B,)       DMA semaphores
):
    B, E = emb_buf.shape
    H = h_ref.shape[1]

    # ---- grid step 0: embedding gather + fused LSTM cell -------------------
    @pl.when(pl.program_id(0) == 0)
    def _lstm_step():
        # issue B row-gather DMAs (all in flight concurrently)
        copies = []
        for b in range(B):
            cp = pltpu.make_async_copy(
                emb_hbm.at[pl.ds(x_sref[b], 1), :],
                emb_buf.at[pl.ds(b, 1), :],
                sem.at[b],
            )
            cp.start()
            copies.append(cp)

        # fill the ctx / h columns of the fused input while the DMAs fly
        inp_buf[:, pl.ds(E, H)] = ctx_ref[...].astype(inp_buf.dtype)
        inp_buf[:, pl.ds(E + H, H)] = h_ref[...].astype(inp_buf.dtype)

        for cp in copies:
            cp.wait()
        inp_buf[:, pl.ds(0, E)] = emb_buf[...]

        # single fused gate matmul: (B, E+2H) @ (E+2H, 4H) -> (B, 4H), f32 acc
        gates = (
            jnp.dot(inp_buf[...], wg_ref[...], preferred_element_type=jnp.float32)
            + b_ref[...]
        )

        # PyTorch LSTMCell gate order: i, f, g, o
        i_g = jax.nn.sigmoid(gates[:, 0 * H:1 * H])
        f_g = jax.nn.sigmoid(gates[:, 1 * H:2 * H])
        g_g = jnp.tanh(gates[:, 2 * H:3 * H])
        o_g = jax.nn.sigmoid(gates[:, 3 * H:4 * H])

        c_new = f_g * c_ref[...] + i_g * g_g
        h_new = o_g * jnp.tanh(c_new)

        # store once in compute dtype so fc tiles do no per-step cast
        h_scr[...] = h_new.astype(h_scr.dtype)
        h_out_ref[...] = h_new.astype(h_out_ref.dtype)
        c_out_ref[...] = c_new.astype(c_out_ref.dtype)

    # ---- every grid step: one lane-dense fc tile over V ----------------------
    logits_ref[...] = (
        jnp.dot(h_scr[...], wfc_ref[...], preferred_element_type=jnp.float32)
        + bfc_ref[...]
    ).astype(logits_ref.dtype)


def preprocess_params(params, compute_dtype=jnp.float32):
    """One-time parameter prep.  Call ONCE, reuse for every decode step."""
    emb = params["embedding"]                      # (V, E)
    w_ih, w_hh = params["w_ih"], params["w_hh"]    # (4H, E+H), (4H, H)
    b_ih, b_hh = params["b_ih"], params["b_hh"]    # (4H,), (4H,)
    w_fc, b_fc = params["w_fc"], params["b_fc"]    # (V, H), (V,)

    V, E = emb.shape
    H = w_hh.shape[1]

    # fused gate weight: rows [0,E)=embedded input, [E,E+H)=context, [E+H,E+2H)=hidden
    w_gates = jnp.concatenate([w_ih, w_hh], axis=1).T        # (E+2H, 4H)
    b = (b_ih + b_hh).reshape(1, 4 * H).astype(jnp.float32)  # (1, 4H)
    wfc_t = w_fc.T                                           # (H, V)
    bfc = b_fc.reshape(1, V).astype(jnp.float32)             # (1, V)

    return {
        "emb": emb.astype(compute_dtype),
        "w_gates": w_gates.astype(compute_dtype),
        "b": b,
        "wfc_t": wfc_t.astype(compute_dtype),
        "bfc": bfc,
    }


def decode_lstm_forward(x_idx, hidden, context_vector, prep, *, tile_v=512):
    """Pallas equivalent of DecodeLSTM.forward.

    x_idx:           (B,) int token ids
    hidden:          tuple (h0, c0), each (B, H) float32
    context_vector:  (B, H) float32
    prep:            output of preprocess_params (weights pre-transposed / fused)
    returns:         (logits (B, V) f32, (h_new, c_new) f32)
    """
    h0, c0 = hidden
    emb = prep["emb"]            # (V, E)
    w_gates = prep["w_gates"]    # (E+2H, 4H)
    b = prep["b"]                # (1, 4H)
    wfc_t = prep["wfc_t"]        # (H, V)
    bfc = prep["bfc"]            # (1, V)

    B = x_idx.shape[0]
    V, E = emb.shape
    H = h0.shape[1]
    cdt = emb.dtype

    # fc tile over V: multiple of 128 lanes, capped at V
    tile_v = min(tile_v, V)
    if V >= 128:
        tile_v = max(128, (tile_v // 128) * 128)
    n_v_tiles = pl.cdiv(V, tile_v)

    x1d = x_idx.astype(jnp.int32).reshape(B)

    def const2(j, x):        # whole-array blocks, fetched once
        return (0, 0)

    def vtile(j, x):         # blocks marching over the vocab axis
        return (0, j)

    out_shapes = (
        jax.ShapeDtypeStruct((B, V), jnp.float32),
        jax.ShapeDtypeStruct((B, H), jnp.float32),
        jax.ShapeDtypeStruct((B, H), jnp.float32),
    )

    logits, h_new, c_new = pl.pallas_call(
        _decode_lstm_kernel,
        out_shape=out_shapes,
        grid_spec=pltpu.PrefetchScalarGridSpec(
            num_scalar_prefetch=1,          # token ids -> SMEM
            grid=(n_v_tiles,),
            in_specs=[
                pl.BlockSpec(memory_space=pl.ANY),            # emb stays in HBM
                pl.BlockSpec((B, H), const2),                 # ctx
                pl.BlockSpec((B, H), const2),                 # h0
                pl.BlockSpec((B, H), const2),                 # c0
                pl.BlockSpec((E + 2 * H, 4 * H), const2),     # fused gate weight
                pl.BlockSpec((1, 4 * H), const2),             # folded bias
                pl.BlockSpec((H, tile_v), vtile),             # fc weight tile
                pl.BlockSpec((1, tile_v), vtile),             # fc bias tile
            ],
            out_specs=[
                pl.BlockSpec((B, tile_v), vtile),             # logits tile
                pl.BlockSpec((B, H), const2),                 # h_new
                pl.BlockSpec((B, H), const2),                 # c_new
            ],
            scratch_shapes=[
                pltpu.VMEM((B, E), cdt),                      # gathered embeddings
                pltpu.VMEM((B, E + 2 * H), cdt),              # fused LSTM input
                pltpu.VMEM((B, H), cdt),                      # h_new (compute dtype)
                pltpu.SemaphoreType.DMA((B,)),                # gather semaphores
            ],
        ),
        compiler_params=pltpu.CompilerParams(
            # V-axis must be sequential: fc tiles reuse h_scr computed at step 0.
            dimension_semantics=("arbitrary",),
            vmem_limit_bytes=32 * 1024 * 1024,
        ),
    )(x1d, emb, context_vector, h0, c0, w_gates, b, wfc_t, bfc)

    return logits, (h_new, c_new)


def _reference_forward(x_idx, hidden, context_vector, params):
    """Pure-JAX reference mirroring torch semantics (for verification)."""
    h0, c0 = hidden
    emb = params["embedding"]
    H = h0.shape[1]
    embedded = jnp.take(emb, x_idx, axis=0)
    inp = jnp.concatenate([embedded, context_vector], axis=1)
    gates = (inp @ params["w_ih"].T + params["b_ih"]
             + h0 @ params["w_hh"].T + params["b_hh"])
    i = jax.nn.sigmoid(gates[:, 0 * H:1 * H])
    f = jax.nn.sigmoid(gates[:, 1 * H:2 * H])
    g = jnp.tanh(gates[:, 2 * H:3 * H])
    o = jax.nn.sigmoid(gates[:, 3 * H:4 * H])
    c_new = f * c0 + i * g
    h_new = o * jnp.tanh(c_new)
    logits = h_new @ params["w_fc"].T + params["b_fc"]
    return logits, (h_new, c_new)


if __name__ == "__main__":
    # small, TPU-friendly sizes consistent with the module (E = H, fc over vocab)
    vocab_size = 512
    embedding_dim = 128
    hidden_dim = 128
    batch = 8

    key = jax.random.PRNGKey(0)
    keys = jax.random.split(key, 10)

    scale = 0.05
    params = {
        "embedding": scale * jax.random.normal(keys[0], (vocab_size, embedding_dim), jnp.float32),
        "w_ih": scale * jax.random.normal(keys[1], (4 * hidden_dim, embedding_dim + hidden_dim), jnp.float32),
        "w_hh": scale * jax.random.normal(keys[2], (4 * hidden_dim, hidden_dim), jnp.float32),
        "b_ih": scale * jax.random.normal(keys[3], (4 * hidden_dim,), jnp.float32),
        "b_hh": scale * jax.random.normal(keys[4], (4 * hidden_dim,), jnp.float32),
        "w_fc": scale * jax.random.normal(keys[5], (vocab_size, hidden_dim), jnp.float32),
        "b_fc": scale * jax.random.normal(keys[6], (vocab_size,), jnp.float32),
    }

    x = jax.random.randint(keys[7], (batch,), 0, vocab_size, dtype=jnp.int32)
    h0 = scale * jax.random.normal(keys[8], (batch, hidden_dim), jnp.float32)
    c0 = scale * jax.random.normal(keys[9], (batch, hidden_dim), jnp.float32)
    context = scale * jax.random.normal(jax.random.PRNGKey(1), (batch, hidden_dim), jnp.float32)

    ref_logits, (ref_h, ref_c) = _reference_forward(x, (h0, c0), context, params)

    # --- f32 path (exact-precision check) ---
    prep_f32 = preprocess_params(params, jnp.float32)   # one-time prep
    logits, (h_new, c_new) = decode_lstm_forward(x, (h0, c0), context, prep_f32, tile_v=256)
    jax.block_until_ready((logits, h_new, c_new))
    np.testing.assert_allclose(np.asarray(logits), np.asarray(ref_logits), rtol=5e-5, atol=1e-5)
    np.testing.assert_allclose(np.asarray(h_new), np.asarray(ref_h), rtol=5e-5, atol=1e-5)
    np.testing.assert_allclose(np.asarray(c_new), np.asarray(ref_c), rtol=5e-5, atol=1e-5)

    # --- bf16-weight path (MXU-native; looser tolerance) ---
    prep_bf16 = preprocess_params(params, jnp.bfloat16)  # one-time prep
    logits_b, (h_b, c_b) = decode_lstm_forward(x, (h0, c0), context, prep_bf16, tile_v=256)
    jax.block_until_ready((logits_b, h_b, c_b))
    np.testing.assert_allclose(np.asarray(logits_b), np.asarray(ref_logits), rtol=2e-2, atol=2e-2)
    np.testing.assert_allclose(np.asarray(h_b), np.asarray(ref_h), rtol=2e-2, atol=2e-2)
    np.testing.assert_allclose(np.asarray(c_b), np.asarray(ref_c), rtol=2e-2, atol=2e-2)

    print("KERNEL_OK")
</pallas_src>

<mosaic_0001>
module attributes {stable_mosaic.version = 11 : i64} {
  func.func @_decode_lstm_kernel(%arg0: i32, %arg1: memref<8xi32, #tpu.memory_space<smem>>, %arg2: memref<512x128xf32, #tpu.memory_space<any>>, %arg3: memref<8x128xf32, #tpu.memory_space<vmem>>, %arg4: memref<8x128xf32, #tpu.memory_space<vmem>>, %arg5: memref<8x128xf32, #tpu.memory_space<vmem>>, %arg6: memref<384x512xf32, #tpu.memory_space<vmem>>, %arg7: memref<1x512xf32, #tpu.memory_space<vmem>>, %arg8: memref<128x256xf32, #tpu.memory_space<vmem>>, %arg9: memref<1x256xf32, #tpu.memory_space<vmem>>, %arg10: memref<8x256xf32, #tpu.memory_space<vmem>>, %arg11: memref<8x128xf32, #tpu.memory_space<vmem>>, %arg12: memref<8x128xf32, #tpu.memory_space<vmem>>, %arg13: memref<8x128xf32, #tpu.memory_space<vmem>>, %arg14: memref<8x384xf32, #tpu.memory_space<vmem>>, %arg15: memref<8x128xf32, #tpu.memory_space<vmem>>, %arg16: memref<8x!tpu.dma_semaphore, #tpu.memory_space<semaphore_mem>>) attributes {dimension_semantics = [#tpu.dimension_semantics<arbitrary>], iteration_bounds = array<i64: 2>, scalar_prefetch = 1 : i64, scratch_operands = 4 : i64, tpu.core_type = #tpu.core_type<tc>, window_params = [{}, {pipeline_mode = #tpu.pipeline_mode<synchronous>, transform_indices = @transform_1, window_bounds = array<i64: 8, 128>}, {pipeline_mode = #tpu.pipeline_mode<synchronous>, transform_indices = @transform_2, window_bounds = array<i64: 8, 128>}, {pipeline_mode = #tpu.pipeline_mode<synchronous>, transform_indices = @transform_3, window_bounds = array<i64: 8, 128>}, {pipeline_mode = #tpu.pipeline_mode<synchronous>, transform_indices = @transform_4, window_bounds = array<i64: 384, 512>}, {pipeline_mode = #tpu.pipeline_mode<synchronous>, transform_indices = @transform_5, window_bounds = array<i64: 1, 512>}, {transform_indices = @transform_6, window_bounds = array<i64: 128, 256>}, {transform_indices = @transform_7, window_bounds = array<i64: 1, 256>}, {transform_indices = @transform_8, window_bounds = array<i64: 8, 256>}, {pipeline_mode = #tpu.pipeline_mode<synchronous>, transform_indices = @transform_9, window_bounds = array<i64: 8, 128>}, {pipeline_mode = #tpu.pipeline_mode<synchronous>, transform_indices = @transform_10, window_bounds = array<i64: 8, 128>}]} {
    %c0_i32 = arith.constant 0 : i32
    %0 = arith.cmpi eq, %arg0, %c0_i32 : i32
    %1 = arith.extui %0 : i1 to i32
    %c0_i32_0 = arith.constant 0 : i32
    %2 = arith.cmpi ne, %1, %c0_i32_0 : i32
    scf.if %2 {
      %c0_8 = arith.constant 0 : index
      %10 = memref.load %arg1[%c0_8] : memref<8xi32, #tpu.memory_space<smem>>
      %c0_i32_9 = arith.constant 0 : i32
      %c0_i32_10 = arith.constant 0 : i32
      %11 = tpu.memref_slice %arg2[%10, %c0_i32_10] : memref<512x128xf32, #tpu.memory_space<any>> -> memref<1x128xf32, #tpu.memory_space<any>>
      %c0_i32_11 = arith.constant 0 : i32
      %c0_i32_12 = arith.constant 0 : i32
      %12 = tpu.memref_slice %arg13[%c0_i32_11, %c0_i32_12] : memref<8x128xf32, #tpu.memory_space<vmem>> -> memref<1x128xf32, #tpu.memory_space<vmem>>
      %13 = tpu.memref_slice %arg16[%c0_i32_9] : memref<8x!tpu.dma_semaphore, #tpu.memory_space<semaphore_mem>> -> memref<1x!tpu.dma_semaphore, #tpu.memory_space<semaphore_mem>>
      %14 = tpu.memref_squeeze %13 : memref<1x!tpu.dma_semaphore, #tpu.memory_space<semaphore_mem>> -> memref<!tpu.dma_semaphore, #tpu.memory_space<semaphore_mem>>
      tpu.enqueue_dma source(%11 : memref<1x128xf32, #tpu.memory_space<any>>) target(%12 : memref<1x128xf32, #tpu.memory_space<vmem>>) target_semaphore(%14 : memref<!tpu.dma_semaphore, #tpu.memory_space<semaphore_mem>>)
      %c1 = arith.constant 1 : index
      %15 = memref.load %arg1[%c1] : memref<8xi32, #tpu.memory_space<smem>>
      %c1_i32 = arith.constant 1 : i32
      %c0_i32_13 = arith.constant 0 : i32
      %16 = tpu.memref_slice %arg2[%15, %c0_i32_13] : memref<512x128xf32, #tpu.memory_space<any>> -> memref<1x128xf32, #tpu.memory_space<any>>
      %c1_i32_14 = arith.constant 1 : i32
      %c0_i32_15 = arith.constant 0 : i32
      %17 = tpu.memref_slice %arg13[%c1_i32_14, %c0_i32_15] : memref<8x128xf32, #tpu.memory_space<vmem>> -> memref<1x128xf32, #tpu.memory_space<vmem>>
      %18 = tpu.memref_slice %arg16[%c1_i32] : memref<8x!tpu.dma_semaphore, #tpu.memory_space<semaphore_mem>> -> memref<1x!tpu.dma_semaphore, #tpu.memory_space<semaphore_mem>>
      %19 = tpu.memref_squeeze %18 : memref<1x!tpu.dma_semaphore, #tpu.memory_space<semaphore_mem>> -> memref<!tpu.dma_semaphore, #tpu.memory_space<semaphore_mem>>
      tpu.enqueue_dma source(%16 : memref<1x128xf32, #tpu.memory_space<any>>) target(%17 : memref<1x128xf32, #tpu.memory_space<vmem>>) target_semaphore(%19 : memref<!tpu.dma_semaphore, #tpu.memory_space<semaphore_mem>>)
      %c2 = arith.constant 2 : index
      %20 = memref.load %arg1[%c2] : memref<8xi32, #tpu.memory_space<smem>>
      %c2_i32 = arith.constant 2 : i32
      %c0_i32_16 = arith.constant 0 : i32
      %21 = tpu.memref_slice %arg2[%20, %c0_i32_16] : memref<512x128xf32, #tpu.memory_space<any>> -> memref<1x128xf32, #tpu.memory_space<any>>
      %c2_i32_17 = arith.constant 2 : i32
      %c0_i32_18 = arith.constant 0 : i32
      %22 = tpu.memref_slice %arg13[%c2_i32_17, %c0_i32_18] : memref<8x128xf32, #tpu.memory_space<vmem>> -> memref<1x128xf32, #tpu.memory_space<vmem>>
      %23 = tpu.memref_slice %arg16[%c2_i32] : memref<8x!tpu.dma_semaphore, #tpu.memory_space<semaphore_mem>> -> memref<1x!tpu.dma_semaphore, #tpu.memory_space<semaphore_mem>>
      %24 = tpu.memref_squeeze %23 : memref<1x!tpu.dma_semaphore, #tpu.memory_space<semaphore_mem>> -> memref<!tpu.dma_semaphore, #tpu.memory_space<semaphore_mem>>
      tpu.enqueue_dma source(%21 : memref<1x128xf32, #tpu.memory_space<any>>) target(%22 : memref<1x128xf32, #tpu.memory_space<vmem>>) target_semaphore(%24 : memref<!tpu.dma_semaphore, #tpu.memory_space<semaphore_mem>>)
      %c3 = arith.constant 3 : index
      %25 = memref.load %arg1[%c3] : memref<8xi32, #tpu.memory_space<smem>>
      %c3_i32 = arith.constant 3 : i32
      %c0_i32_19 = arith.constant 0 : i32
      %26 = tpu.memref_slice %arg2[%25, %c0_i32_19] : memref<512x128xf32, #tpu.memory_space<any>> -> memref<1x128xf32, #tpu.memory_space<any>>
      %c3_i32_20 = arith.constant 3 : i32
      %c0_i32_21 = arith.constant 0 : i32
      %27 = tpu.memref_slice %arg13[%c3_i32_20, %c0_i32_21] : memref<8x128xf32, #tpu.memory_space<vmem>> -> memref<1x128xf32, #tpu.memory_space<vmem>>
      %28 = tpu.memref_slice %arg16[%c3_i32] : memref<8x!tpu.dma_semaphore, #tpu.memory_space<semaphore_mem>> -> memref<1x!tpu.dma_semaphore, #tpu.memory_space<semaphore_mem>>
      %29 = tpu.memref_squeeze %28 : memref<1x!tpu.dma_semaphore, #tpu.memory_space<semaphore_mem>> -> memref<!tpu.dma_semaphore, #tpu.memory_space<semaphore_mem>>
      tpu.enqueue_dma source(%26 : memref<1x128xf32, #tpu.memory_space<any>>) target(%27 : memref<1x128xf32, #tpu.memory_space<vmem>>) target_semaphore(%29 : memref<!tpu.dma_semaphore, #tpu.memory_space<semaphore_mem>>)
      %c4 = arith.constant 4 : index
      %30 = memref.load %arg1[%c4] : memref<8xi32, #tpu.memory_space<smem>>
      %c4_i32 = arith.constant 4 : i32
      %c0_i32_22 = arith.constant 0 : i32
      %31 = tpu.memref_slice %arg2[%30, %c0_i32_22] : memref<512x128xf32, #tpu.memory_space<any>> -> memref<1x128xf32, #tpu.memory_space<any>>
      %c4_i32_23 = arith.constant 4 : i32
      %c0_i32_24 = arith.constant 0 : i32
      %32 = tpu.memref_slice %arg13[%c4_i32_23, %c0_i32_24] : memref<8x128xf32, #tpu.memory_space<vmem>> -> memref<1x128xf32, #tpu.memory_space<vmem>>
      %33 = tpu.memref_slice %arg16[%c4_i32] : memref<8x!tpu.dma_semaphore, #tpu.memory_space<semaphore_mem>> -> memref<1x!tpu.dma_semaphore, #tpu.memory_space<semaphore_mem>>
      %34 = tpu.memref_squeeze %33 : memref<1x!tpu.dma_semaphore, #tpu.memory_space<semaphore_mem>> -> memref<!tpu.dma_semaphore, #tpu.memory_space<semaphore_mem>>
      tpu.enqueue_dma source(%31 : memref<1x128xf32, #tpu.memory_space<any>>) target(%32 : memref<1x128xf32, #tpu.memory_space<vmem>>) target_semaphore(%34 : memref<!tpu.dma_semaphore, #tpu.memory_space<semaphore_mem>>)
      %c5 = arith.constant 5 : index
      %35 = memref.load %arg1[%c5] : memref<8xi32, #tpu.memory_space<smem>>
      %c5_i32 = arith.constant 5 : i32
      %c0_i32_25 = arith.constant 0 : i32
      %36 = tpu.memref_slice %arg2[%35, %c0_i32_25] : memref<512x128xf32, #tpu.memory_space<any>> -> memref<1x128xf32, #tpu.memory_space<any>>
      %c5_i32_26 = arith.constant 5 : i32
      %c0_i32_27 = arith.constant 0 : i32
      %37 = tpu.memref_slice %arg13[%c5_i32_26, %c0_i32_27] : memref<8x128xf32, #tpu.memory_space<vmem>> -> memref<1x128xf32, #tpu.memory_space<vmem>>
      %38 = tpu.memref_slice %arg16[%c5_i32] : memref<8x!tpu.dma_semaphore, #tpu.memory_space<semaphore_mem>> -> memref<1x!tpu.dma_semaphore, #tpu.memory_space<semaphore_mem>>
      %39 = tpu.memref_squeeze %38 : memref<1x!tpu.dma_semaphore, #tpu.memory_space<semaphore_mem>> -> memref<!tpu.dma_semaphore, #tpu.memory_space<semaphore_mem>>
      tpu.enqueue_dma source(%36 : memref<1x128xf32, #tpu.memory_space<any>>) target(%37 : memref<1x128xf32, #tpu.memory_space<vmem>>) target_semaphore(%39 : memref<!tpu.dma_semaphore, #tpu.memory_space<semaphore_mem>>)
      %c6 = arith.constant 6 : index
      %40 = memref.load %arg1[%c6] : memref<8xi32, #tpu.memory_space<smem>>
      %c6_i32 = arith.constant 6 : i32
      %c0_i32_28 = arith.constant 0 : i32
      %41 = tpu.memref_slice %arg2[%40, %c0_i32_28] : memref<512x128xf32, #tpu.memory_space<any>> -> memref<1x128xf32, #tpu.memory_space<any>>
      %c6_i32_29 = arith.constant 6 : i32
      %c0_i32_30 = arith.constant 0 : i32
      %42 = tpu.memref_slice %arg13[%c6_i32_29, %c0_i32_30] : memref<8x128xf32, #tpu.memory_space<vmem>> -> memref<1x128xf32, #tpu.memory_space<vmem>>
      %43 = tpu.memref_slice %arg16[%c6_i32] : memref<8x!tpu.dma_semaphore, #tpu.memory_space<semaphore_mem>> -> memref<1x!tpu.dma_semaphore, #tpu.memory_space<semaphore_mem>>
      %44 = tpu.memref_squeeze %43 : memref<1x!tpu.dma_semaphore, #tpu.memory_space<semaphore_mem>> -> memref<!tpu.dma_semaphore, #tpu.memory_space<semaphore_mem>>
      tpu.enqueue_dma source(%41 : memref<1x128xf32, #tpu.memory_space<any>>) target(%42 : memref<1x128xf32, #tpu.memory_space<vmem>>) target_semaphore(%44 : memref<!tpu.dma_semaphore, #tpu.memory_space<semaphore_mem>>)
      %c7 = arith.constant 7 : index
      %45 = memref.load %arg1[%c7] : memref<8xi32, #tpu.memory_space<smem>>
      %c7_i32 = arith.constant 7 : i32
      %c0_i32_31 = arith.constant 0 : i32
      %46 = tpu.memref_slice %arg2[%45, %c0_i32_31] : memref<512x128xf32, #tpu.memory_space<any>> -> memref<1x128xf32, #tpu.memory_space<any>>
      %c7_i32_32 = arith.constant 7 : i32
      %c0_i32_33 = arith.constant 0 : i32
      %47 = tpu.memref_slice %arg13[%c7_i32_32, %c0_i32_33] : memref<8x128xf32, #tpu.memory_space<vmem>> -> memref<1x128xf32, #tpu.memory_space<vmem>>
      %48 = tpu.memref_slice %arg16[%c7_i32] : memref<8x!tpu.dma_semaphore, #tpu.memory_space<semaphore_mem>> -> memref<1x!tpu.dma_semaphore, #tpu.memory_space<semaphore_mem>>
      %49 = tpu.memref_squeeze %48 : memref<1x!tpu.dma_semaphore, #tpu.memory_space<semaphore_mem>> -> memref<!tpu.dma_semaphore, #tpu.memory_space<semaphore_mem>>
      tpu.enqueue_dma source(%46 : memref<1x128xf32, #tpu.memory_space<any>>) target(%47 : memref<1x128xf32, #tpu.memory_space<vmem>>) target_semaphore(%49 : memref<!tpu.dma_semaphore, #tpu.memory_space<semaphore_mem>>)
      %c0_34 = arith.constant 0 : index
      %c0_35 = arith.constant 0 : index
      %50 = vector.load %arg3[%c0_34, %c0_35] : memref<8x128xf32, #tpu.memory_space<vmem>>, vector<8x128xf32>
      %c0_36 = arith.constant 0 : index
      %c128 = arith.constant 128 : index
      %51 = vector.load %arg14[%c0_36, %c128] : memref<8x384xf32, #tpu.memory_space<vmem>>, vector<8x128xf32>
      tpu.vector_store %arg14[%c0_36, %c128], %50 {strides = array<i32>} : memref<8x384xf32, #tpu.memory_space<vmem>>, vector<8x128xf32>,
      %c0_37 = arith.constant 0 : index
      %c0_38 = arith.constant 0 : index
      %52 = vector.load %arg4[%c0_37, %c0_38] : memref<8x128xf32, #tpu.memory_space<vmem>>, vector<8x128xf32>
      %c0_39 = arith.constant 0 : index
      %c256 = arith.constant 256 : index
      %53 = vector.load %arg14[%c0_39, %c256] : memref<8x384xf32, #tpu.memory_space<vmem>>, vector<8x128xf32>
      tpu.vector_store %arg14[%c0_39, %c256], %52 {strides = array<i32>} : memref<8x384xf32, #tpu.memory_space<vmem>>, vector<8x128xf32>,
      %c0_i32_40 = arith.constant 0 : i32
      %c0_i32_41 = arith.constant 0 : i32
      %54 = tpu.memref_slice %arg2[%10, %c0_i32_41] : memref<512x128xf32, #tpu.memory_space<any>> -> memref<1x128xf32, #tpu.memory_space<any>>
      %c0_i32_42 = arith.constant 0 : i32
      %c0_i32_43 = arith.constant 0 : i32
      %55 = tpu.memref_slice %arg13[%c0_i32_42, %c0_i32_43] : memref<8x128xf32, #tpu.memory_space<vmem>> -> memref<1x128xf32, #tpu.memory_space<vmem>>
      %56 = tpu.memref_slice %arg16[%c0_i32_40] : memref<8x!tpu.dma_semaphore, #tpu.memory_space<semaphore_mem>> -> memref<1x!tpu.dma_semaphore, #tpu.memory_space<semaphore_mem>>
      %57 = tpu.memref_squeeze %56 : memref<1x!tpu.dma_semaphore, #tpu.memory_space<semaphore_mem>> -> memref<!tpu.dma_semaphore, #tpu.memory_space<semaphore_mem>>
      tpu.wait_dma2 semaphore(%57 : memref<!tpu.dma_semaphore, #tpu.memory_space<semaphore_mem>>) src(%54 : memref<1x128xf32, #tpu.memory_space<any>>) dst(%55 : memref<1x128xf32, #tpu.memory_space<vmem>>)
      %c1_i32_44 = arith.constant 1 : i32
      %c0_i32_45 = arith.constant 0 : i32
      %58 = tpu.memref_slice %arg2[%15, %c0_i32_45] : memref<512x128xf32, #tpu.memory_space<any>> -> memref<1x128xf32, #tpu.memory_space<any>>
      %c1_i32_46 = arith.constant 1 : i32
      %c0_i32_47 = arith.constant 0 : i32
      %59 = tpu.memref_slice %arg13[%c1_i32_46, %c0_i32_47] : memref<8x128xf32, #tpu.memory_space<vmem>> -> memref<1x128xf32, #tpu.memory_space<vmem>>
      %60 = tpu.memref_slice %arg16[%c1_i32_44] : memref<8x!tpu.dma_semaphore, #tpu.memory_space<semaphore_mem>> -> memref<1x!tpu.dma_semaphore, #tpu.memory_space<semaphore_mem>>
      %61 = tpu.memref_squeeze %60 : memref<1x!tpu.dma_semaphore, #tpu.memory_space<semaphore_mem>> -> memref<!tpu.dma_semaphore, #tpu.memory_space<semaphore_mem>>
      tpu.wait_dma2 semaphore(%61 : memref<!tpu.dma_semaphore, #tpu.memory_space<semaphore_mem>>) src(%58 : memref<1x128xf32, #tpu.memory_space<any>>) dst(%59 : memref<1x128xf32, #tpu.memory_space<vmem>>)
      %c2_i32_48 = arith.constant 2 : i32
      %c0_i32_49 = arith.constant 0 : i32
      %62 = tpu.memref_slice %arg2[%20, %c0_i32_49] : memref<512x128xf32, #tpu.memory_space<any>> -> memref<1x128xf32, #tpu.memory_space<any>>
      %c2_i32_50 = arith.constant 2 : i32
      %c0_i32_51 = arith.constant 0 : i32
      %63 = tpu.memref_slice %arg13[%c2_i32_50, %c0_i32_51] : memref<8x128xf32, #tpu.memory_space<vmem>> -> memref<1x128xf32, #tpu.memory_space<vmem>>
      %64 = tpu.memref_slice %arg16[%c2_i32_48] : memref<8x!tpu.dma_semaphore, #tpu.memory_space<semaphore_mem>> -> memref<1x!tpu.dma_semaphore, #tpu.memory_space<semaphore_mem>>
      %65 = tpu.memref_squeeze %64 : memref<1x!tpu.dma_semaphore, #tpu.memory_space<semaphore_mem>> -> memref<!tpu.dma_semaphore, #tpu.memory_space<semaphore_mem>>
      tpu.wait_dma2 semaphore(%65 : memref<!tpu.dma_semaphore, #tpu.memory_space<semaphore_mem>>) src(%62 : memref<1x128xf32, #tpu.memory_space<any>>) dst(%63 : memref<1x128xf32, #tpu.memory_space<vmem>>)
      %c3_i32_52 = arith.constant 3 : i32
      %c0_i32_53 = arith.constant 0 : i32
      %66 = tpu.memref_slice %arg2[%25, %c0_i32_53] : memref<512x128xf32, #tpu.memory_space<any>> -> memref<1x128xf32, #tpu.memory_space<any>>
      %c3_i32_54 = arith.constant 3 : i32
      %c0_i32_55 = arith.constant 0 : i32
      %67 = tpu.memref_slice %arg13[%c3_i32_54, %c0_i32_55] : memref<8x128xf32, #tpu.memory_space<vmem>> -> memref<1x128xf32, #tpu.memory_space<vmem>>
      %68 = tpu.memref_slice %arg16[%c3_i32_52] : memref<8x!tpu.dma_semaphore, #tpu.memory_space<semaphore_mem>> -> memref<1x!tpu.dma_semaphore, #tpu.memory_space<semaphore_mem>>
      %69 = tpu.memref_squeeze %68 : memref<1x!tpu.dma_semaphore, #tpu.memory_space<semaphore_mem>> -> memref<!tpu.dma_semaphore, #tpu.memory_space<semaphore_mem>>
      tpu.wait_dma2 semaphore(%69 : memref<!tpu.dma_semaphore, #tpu.memory_space<semaphore_mem>>) src(%66 : memref<1x128xf32, #tpu.memory_space<any>>) dst(%67 : memref<1x128xf32, #tpu.memory_space<vmem>>)
      %c4_i32_56 = arith.constant 4 : i32
      %c0_i32_57 = arith.constant 0 : i32
      %70 = tpu.memref_slice %arg2[%30, %c0_i32_57] : memref<512x128xf32, #tpu.memory_space<any>> -> memref<1x128xf32, #tpu.memory_space<any>>
      %c4_i32_58 = arith.constant 4 : i32
      %c0_i32_59 = arith.constant 0 : i32
      %71 = tpu.memref_slice %arg13[%c4_i32_58, %c0_i32_59] : memref<8x128xf32, #tpu.memory_space<vmem>> -> memref<1x128xf32, #tpu.memory_space<vmem>>
      %72 = tpu.memref_slice %arg16[%c4_i32_56] : memref<8x!tpu.dma_semaphore, #tpu.memory_space<semaphore_mem>> -> memref<1x!tpu.dma_semaphore, #tpu.memory_space<semaphore_mem>>
      %73 = tpu.memref_squeeze %72 : memref<1x!tpu.dma_semaphore, #tpu.memory_space<semaphore_mem>> -> memref<!tpu.dma_semaphore, #tpu.memory_space<semaphore_mem>>
      tpu.wait_dma2 semaphore(%73 : memref<!tpu.dma_semaphore, #tpu.memory_space<semaphore_mem>>) src(%70 : memref<1x128xf32, #tpu.memory_space<any>>) dst(%71 : memref<1x128xf32, #tpu.memory_space<vmem>>)
      %c5_i32_60 = arith.constant 5 : i32
      %c0_i32_61 = arith.constant 0 : i32
      %74 = tpu.memref_slice %arg2[%35, %c0_i32_61] : memref<512x128xf32, #tpu.memory_space<any>> -> memref<1x128xf32, #tpu.memory_space<any>>
      %c5_i32_62 = arith.constant 5 : i32
      %c0_i32_63 = arith.constant 0 : i32
      %75 = tpu.memref_slice %arg13[%c5_i32_62, %c0_i32_63] : memref<8x128xf32, #tpu.memory_space<vmem>> -> memref<1x128xf32, #tpu.memory_space<vmem>>
      %76 = tpu.memref_slice %arg16[%c5_i32_60] : memref<8x!tpu.dma_semaphore, #tpu.memory_space<semaphore_mem>> -> memref<1x!tpu.dma_semaphore, #tpu.memory_space<semaphore_mem>>
      %77 = tpu.memref_squeeze %76 : memref<1x!tpu.dma_semaphore, #tpu.memory_space<semaphore_mem>> -> memref<!tpu.dma_semaphore, #tpu.memory_space<semaphore_mem>>
      tpu.wait_dma2 semaphore(%77 : memref<!tpu.dma_semaphore, #tpu.memory_space<semaphore_mem>>) src(%74 : memref<1x128xf32, #tpu.memory_space<any>>) dst(%75 : memref<1x128xf32, #tpu.memory_space<vmem>>)
      %c6_i32_64 = arith.constant 6 : i32
      %c0_i32_65 = arith.constant 0 : i32
      %78 = tpu.memref_slice %arg2[%40, %c0_i32_65] : memref<512x128xf32, #tpu.memory_space<any>> -> memref<1x128xf32, #tpu.memory_space<any>>
      %c6_i32_66 = arith.constant 6 : i32
      %c0_i32_67 = arith.constant 0 : i32
      %79 = tpu.memref_slice %arg13[%c6_i32_66, %c0_i32_67] : memref<8x128xf32, #tpu.memory_space<vmem>> -> memref<1x128xf32, #tpu.memory_space<vmem>>
      %80 = tpu.memref_slice %arg16[%c6_i32_64] : memref<8x!tpu.dma_semaphore, #tpu.memory_space<semaphore_mem>> -> memref<1x!tpu.dma_semaphore, #tpu.memory_space<semaphore_mem>>
      %81 = tpu.memref_squeeze %80 : memref<1x!tpu.dma_semaphore, #tpu.memory_space<semaphore_mem>> -> memref<!tpu.dma_semaphore, #tpu.memory_space<semaphore_mem>>
      tpu.wait_dma2 semaphore(%81 : memref<!tpu.dma_semaphore, #tpu.memory_space<semaphore_mem>>) src(%78 : memref<1x128xf32, #tpu.memory_space<any>>) dst(%79 : memref<1x128xf32, #tpu.memory_space<vmem>>)
      %c7_i32_68 = arith.constant 7 : i32
      %c0_i32_69 = arith.constant 0 : i32
      %82 = tpu.memref_slice %arg2[%45, %c0_i32_69] : memref<512x128xf32, #tpu.memory_space<any>> -> memref<1x128xf32, #tpu.memory_space<any>>
      %c7_i32_70 = arith.constant 7 : i32
      %c0_i32_71 = arith.constant 0 : i32
      %83 = tpu.memref_slice %arg13[%c7_i32_70, %c0_i32_71] : memref<8x128xf32, #tpu.memory_space<vmem>> -> memref<1x128xf32, #tpu.memory_space<vmem>>
      %84 = tpu.memref_slice %arg16[%c7_i32_68] : memref<8x!tpu.dma_semaphore, #tpu.memory_space<semaphore_mem>> -> memref<1x!tpu.dma_semaphore, #tpu.memory_space<semaphore_mem>>
      %85 = tpu.memref_squeeze %84 : memref<1x!tpu.dma_semaphore, #tpu.memory_space<semaphore_mem>> -> memref<!tpu.dma_semaphore, #tpu.memory_space<semaphore_mem>>
      tpu.wait_dma2 semaphore(%85 : memref<!tpu.dma_semaphore, #tpu.memory_space<semaphore_mem>>) src(%82 : memref<1x128xf32, #tpu.memory_space<any>>) dst(%83 : memref<1x128xf32, #tpu.memory_space<vmem>>)
      %c0_72 = arith.constant 0 : index
      %c0_73 = arith.constant 0 : index
      %86 = vector.load %arg13[%c0_72, %c0_73] : memref<8x128xf32, #tpu.memory_space<vmem>>, vector<8x128xf32>
      %c0_74 = arith.constant 0 : index
      %c0_75 = arith.constant 0 : index
      %87 = vector.load %arg14[%c0_74, %c0_75] : memref<8x384xf32, #tpu.memory_space<vmem>>, vector<8x128xf32>
      tpu.vector_store %arg14[%c0_74, %c0_75], %86 {strides = array<i32>} : memref<8x384xf32, #tpu.memory_space<vmem>>, vector<8x128xf32>,
      %c0_76 = arith.constant 0 : index
      %c0_77 = arith.constant 0 : index
      %88 = vector.load %arg14[%c0_76, %c0_77] : memref<8x384xf32, #tpu.memory_space<vmem>>, vector<8x384xf32>
      %c0_78 = arith.constant 0 : index
      %c0_79 = arith.constant 0 : index
      %89 = vector.load %arg6[%c0_78, %c0_79] : memref<384x512xf32, #tpu.memory_space<vmem>>, vector<384x512xf32>
      %cst_80 = arith.constant dense<0.000000e+00> : vector<8x512xf32>
      %90 = tpu.matmul %88, %89, %cst_80 {dimension_numbers = #tpu.dot_dimension_numbers<[1], [0], [0], [1], [0, 0, 1, 1], [], []>} : vector<8x384xf32>, vector<384x512xf32>, vector<8x512xf32> -> vector<8x512xf32>
      %c0_81 = arith.constant 0 : index
      %c0_82 = arith.constant 0 : index
      %91 = vector.load %arg7[%c0_81, %c0_82] : memref<1x512xf32, #tpu.memory_space<vmem>>, vector<1x512xf32>
      %92 = vector.broadcast %91 : vector<1x512xf32> to vector<8x512xf32>
      %93 = arith.addf %90, %92 : vector<8x512xf32>
      %94 = vector.extract_strided_slice %93 {offsets = [0, 0], sizes = [8, 128], strides = [1, 1]} : vector<8x512xf32> to vector<8x128xf32>
      %95 = arith.negf %94 : vector<8x128xf32>
      %96 = math.exp %95 : vector<8x128xf32>
      %cst_83 = arith.constant 1.000000e+00 : f32
      %97 = vector.broadcast %cst_83 : f32 to vector<8x128xf32>
      %98 = arith.addf %97, %96 : vector<8x128xf32>
      %99 = arith.divf %97, %98 : vector<8x128xf32>
      %100 = vector.extract_strided_slice %93 {offsets = [0, 128], sizes = [8, 128], strides = [1, 1]} : vector<8x512xf32> to vector<8x128xf32>
      %101 = arith.negf %100 : vector<8x128xf32>
      %102 = math.exp %101 : vector<8x128xf32>
      %cst_84 = arith.constant 1.000000e+00 : f32
      %103 = vector.broadcast %cst_84 : f32 to vector<8x128xf32>
      %104 = arith.addf %103, %102 : vector<8x128xf32>
      %105 = arith.divf %103, %104 : vector<8x128xf32>
      %106 = vector.extract_strided_slice %93 {offsets = [0, 256], sizes = [8, 128], strides = [1, 1]} : vector<8x512xf32> to vector<8x128xf32>
      %107 = math.tanh %106 : vector<8x128xf32>
      %108 = vector.extract_strided_slice %93 {offsets = [0, 384], sizes = [8, 128], strides = [1, 1]} : vector<8x512xf32> to vector<8x128xf32>
      %109 = arith.negf %108 : vector<8x128xf32>
      %110 = math.exp %109 : vector<8x128xf32>
      %cst_85 = arith.constant 1.000000e+00 : f32
      %111 = vector.broadcast %cst_85 : f32 to vector<8x128xf32>
      %112 = arith.addf %111, %110 : vector<8x128xf32>
      %113 = arith.divf %111, %112 : vector<8x128xf32>
      %c0_86 = arith.constant 0 : index
      %c0_87 = arith.constant 0 : index
      %114 = vector.load %arg5[%c0_86, %c0_87] : memref<8x128xf32, #tpu.memory_space<vmem>>, vector<8x128xf32>
      %115 = arith.mulf %105, %114 : vector<8x128xf32>
      %116 = arith.mulf %99, %107 : vector<8x128xf32>
      %117 = arith.addf %115, %116 : vector<8x128xf32>
      %118 = math.tanh %117 : vector<8x128xf32>
      %119 = arith.mulf %113, %118 : vector<8x128xf32>
      %c0_88 = arith.constant 0 : index
      %c0_89 = arith.constant 0 : index
      %120 = vector.load %arg15[%c0_88, %c0_89] : memref<8x128xf32, #tpu.memory_space<vmem>>, vector<8x128xf32>
      tpu.vector_store %arg15[%c0_88, %c0_89], %119 {strides = array<i32>} : memref<8x128xf32, #tpu.memory_space<vmem>>, vector<8x128xf32>,
      %c0_90 = arith.constant 0 : index
      %c0_91 = arith.constant 0 : index
      %121 = vector.load %arg11[%c0_90, %c0_91] : memref<8x128xf32, #tpu.memory_space<vmem>>, vector<8x128xf32>
      tpu.vector_store %arg11[%c0_90, %c0_91], %119 {strides = array<i32>} : memref<8x128xf32, #tpu.memory_space<vmem>>, vector<8x128xf32>,
      %c0_92 = arith.constant 0 : index
      %c0_93 = arith.constant 0 : index
      %122 = vector.load %arg12[%c0_92, %c0_93] : memref<8x128xf32, #tpu.memory_space<vmem>>, vector<8x128xf32>
      tpu.vector_store %arg12[%c0_92, %c0_93], %117 {strides = array<i32>} : memref<8x128xf32, #tpu.memory_space<vmem>>, vector<8x128xf32>,
    } else {
    }
    %c0 = arith.constant 0 : index
    %c0_1 = arith.constant 0 : index
    %3 = vector.load %arg15[%c0, %c0_1] : memref<8x128xf32, #tpu.memory_space<vmem>>, vector<8x128xf32>
    %c0_2 = arith.constant 0 : index
    %c0_3 = arith.constant 0 : index
    %4 = vector.load %arg8[%c0_2, %c0_3] : memref<128x256xf32, #tpu.memory_space<vmem>>, vector<128x256xf32>
    %cst = arith.constant dense<0.000000e+00> : vector<8x256xf32>
    %5 = tpu.matmul %3, %4, %cst {dimension_numbers = #tpu.dot_dimension_numbers<[1], [0], [0], [1], [0, 0, 1, 1], [], []>} : vector<8x128xf32>, vector<128x256xf32>, vector<8x256xf32> -> vector<8x256xf32>
    %c0_4 = arith.constant 0 : index
    %c0_5 = arith.constant 0 : index
    %6 = vector.load %arg9[%c0_4, %c0_5] : memref<1x256xf32, #tpu.memory_space<vmem>>, vector<1x256xf32>
    %7 = vector.broadcast %6 : vector<1x256xf32> to vector<8x256xf32>
    %8 = arith.addf %5, %7 : vector<8x256xf32>
    %c0_6 = arith.constant 0 : index
    %c0_7 = arith.constant 0 : index
    %9 = vector.load %arg10[%c0_6, %c0_7] : memref<8x256xf32, #tpu.memory_space<vmem>>, vector<8x256xf32>
    tpu.vector_store %arg10[%c0_6, %c0_7], %8 {strides = array<i32>} : memref<8x256xf32, #tpu.memory_space<vmem>>, vector<8x256xf32>,
    return
  }
  func.func @transform_1(%arg0: i32, %arg1: memref<8xi32, #tpu.memory_space<smem>>) -> (i32, i32) {
    %c0_i32 = arith.constant 0 : i32
    %c0_i32_0 = arith.constant 0 : i32
    %c0_i32_1 = arith.constant 0 : i32
    return %c0_i32, %c0_i32_0 : i32, i32
  }
  func.func @transform_2(%arg0: i32, %arg1: memref<8xi32, #tpu.memory_space<smem>>) -> (i32, i32) {
    %c0_i32 = arith.constant 0 : i32
    %c0_i32_0 = arith.constant 0 : i32
    %c0_i32_1 = arith.constant 0 : i32
    return %c0_i32, %c0_i32_0 : i32, i32
  }
  func.func @transform_3(%arg0: i32, %arg1: memref<8xi32, #tpu.memory_space<smem>>) -> (i32, i32) {
    %c0_i32 = arith.constant 0 : i32
    %c0_i32_0 = arith.constant 0 : i32
    %c0_i32_1 = arith.constant 0 : i32
    return %c0_i32, %c0_i32_0 : i32, i32
  }
  func.func @transform_4(%arg0: i32, %arg1: memref<8xi32, #tpu.memory_space<smem>>) -> (i32, i32) {
    %c0_i32 = arith.constant 0 : i32
    %c0_i32_0 = arith.constant 0 : i32
    %c0_i32_1 = arith.constant 0 : i32
    return %c0_i32, %c0_i32_0 : i32, i32
  }
  func.func @transform_5(%arg0: i32, %arg1: memref<8xi32, #tpu.memory_space<smem>>) -> (i32, i32) {
    %c0_i32 = arith.constant 0 : i32
    %c0_i32_0 = arith.constant 0 : i32
    %c0_i32_1 = arith.constant 0 : i32
    return %c0_i32, %c0_i32_0 : i32, i32
  }
  func.func @transform_6(%arg0: i32, %arg1: memref<8xi32, #tpu.memory_space<smem>>) -> (i32, i32) {
    %c0_i32 = arith.constant 0 : i32
    %c0_i32_0 = arith.constant 0 : i32
    return %c0_i32, %arg0 : i32, i32
  }
  func.func @transform_7(%arg0: i32, %arg1: memref<8xi32, #tpu.memory_space<smem>>) -> (i32, i32) {
    %c0_i32 = arith.constant 0 : i32
    %c0_i32_0 = arith.constant 0 : i32
    return %c0_i32, %arg0 : i32, i32
  }
  func.func @transform_8(%arg0: i32, %arg1: memref<8xi32, #tpu.memory_space<smem>>) -> (i32, i32) {
    %c0_i32 = arith.constant 0 : i32
    %c0_i32_0 = arith.constant 0 : i32
    return %c0_i32, %arg0 : i32, i32
  }
  func.func @transform_9(%arg0: i32, %arg1: memref<8xi32, #tpu.memory_space<smem>>) -> (i32, i32) {
    %c0_i32 = arith.constant 0 : i32
    %c0_i32_0 = arith.constant 0 : i32
    %c0_i32_1 = arith.constant 0 : i32
    return %c0_i32, %c0_i32_0 : i32, i32
  }
  func.func @transform_10(%arg0: i32, %arg1: memref<8xi32, #tpu.memory_space<smem>>) -> (i32, i32) {
    %c0_i32 = arith.constant 0 : i32
    %c0_i32_0 = arith.constant 0 : i32
    %c0_i32_1 = arith.constant 0 : i32
    return %c0_i32, %c0_i32_0 : i32, i32
  }
}

</mosaic_0001>

<bundles_post_ra>
// kernel: tpu_custom_call.1
= control target key start
LH: loop header
LB: loop body
LE: loop exit
PB: predicated region body
PF: predicated region fallthrough
CT: control target
= control target key end

     0   :  { %s2192_s20 = smov [#allocation7]   ;;  %s2650_s0 = inlined_call_operand.hbm [shape: s32[8], index: 0, kind: input, shape index: {}]   ;;  %s2651_s1 = inlined_call_operand.hbm [shape: f32[512,128], index: 1, kind: input, shape index: {}]   ;;  %s2652_s2 = inlined_call_operand.hbm [shape: f32[8,128], index: 2, kind: input, shape index: {}]   ;;  %s2653_s3 = inlined_call_operand.hbm [shape: f32[8,128], index: 3, kind: input, shape index: {}]   ;;  %s2654_s4 = inlined_call_operand.hbm [shape: f32[8,128], index: 4, kind: input, shape index: {}]   ;;  %s2655_s5 = inlined_call_operand.hbm [shape: f32[384,512], index: 5, kind: input, shape index: {}]   ;;  %s2656_s6 = inlined_call_operand.vmem [shape: f32[1,512], index: 6, kind: input, shape index: {}]   ;;  %s2657_s7 = inlined_call_operand.hbm [shape: f32[128,512], index: 7, kind: input, shape index: {}]   ;;  %s2658_s8 = inlined_call_operand.hbm [shape: f32[1,512], index: 8, kind: input, shape index: {}]   ;;  %s2659_s9 = inlined_call_operand.hbm [shape: f32[8,512], index: 9, kind: output, shape index: {0}]   ;;  %s2660_s10 = inlined_call_operand.hbm [shape: f32[8,128], index: 10, kind: output, shape index: {1}]   ;;  %s2661_s11 = inlined_call_operand.hbm [shape: f32[8,128], index: 11, kind: output, shape index: {2}]  }
   0x1   :  { %2672 = sst [smem:[#allocation61_spill]] %s2652_s2  ;;  %s18_s19 = sshll.u32 %s2650_s0, 4  ;;  %s19_s19 = int_to_ptr.hbm [resolvable:$true] %s18_s19 }
   0x2   :  { %2673 = sst [smem:[#allocation62_spill]] %s2653_s3 }
   0x3   :  { %2674 = sst [smem:[#allocation63_spill]] %s2654_s4 }
   0x4   :  { %2675 = sst [smem:[#allocation64_spill]] %s2655_s5 }
   0x5   :  { %2676 = sst [smem:[#allocation65_spill]] %s2659_s9 }
   0x6   :  { %2677 = sst [smem:[#allocation66_spill]] %s2661_s11 }
   0x7   :  { %21 = dma.hbm_to_smem %s19_s19, 16, %s2192_s20, [#allocation6] }
   0x8   :  { %2134 = dma.done.wait [#allocation6], 16 }
   0x9   :  { %2135 = vsyncadd [#allocation6], 4294967280 }
   0xa   :  { %24 = sfence }
   0xb   :  { %25 = vsyncpa [#allocation9], 0 }
   0xc   :  { %26 = vsyncpa [#allocation12], 0 }
   0xd   :  { %27 = vsyncpa [#allocation15], 0 }
   0xe   :  { %28 = vsyncpa [#allocation10], 0 }
   0xf   :  { %30 = vsyncpa [#allocation10 + $0x1], 0 }
  0x10   :  { %31 = vsyncpa [#allocation20], 0  ;;  %s2274_s21 = smov 0   ;;  %s2276_s22 = smov 0  }
  0x11   :  { %s2278_s23 = smov 0   ;;  %s2280_s24 = smov 0  }
  0x12 LB: > { %2678 = sst [smem:[#allocation55_spill]] %s2178_s21  ;;  %s2295_s0 = sadd.s32 4294967295, %s2190_s24   ;;  %s2190_s24 = sphi %s2280_s24, %s2716_s24   ;;  %s2186_s23 = sphi %s2278_s23, %s2720_s23   ;;  %s2182_s22 = sphi %s2276_s22, %s2719_s22   ;;  %s2178_s21 = sphi %s2274_s21, %s2718_s21  }
  0x13   : > { %s1465_s25 = sadd.s32 4294967294, %s2190_s24   ;;  %s2299_s26 = sadd.s32 1, %s2190_s24  }
  0x14   : > { %2679 = sst [smem:[#allocation56_spill]] %s2299_s26  ;;  %s149_s27 = sadd.s32 1, %s2186_s23 }
  0x15   : > { %s146_s28 = ssub.s32 %s2190_s24, %s2299_s26  ;;  %p156_p0 = scmp.ne.s32.totalorder %s2186_s23, %s2182_s22 }
  0x16   : > { %p147_p1 = scmp.eq.s32.totalorder %s146_s28, 0  ;;  %p157_p2 = scmp.eq.s32.totalorder %s2190_s24, 0 }
  0x17   : > { %p162_p3 = scmp.ne.s32.totalorder %s2182_s22, %s2178_s21  ;;  %p2670_p4 = scmp.eq.s32.totalorder %s2295_s0, 0 }
  0x18   : > { %s2311_s29 = scalar_select %p147_p1, %s2186_s23, %s149_s27  }
  0x19   : > { %p2313_p5 = por %p157_p2, %p156_p0  ;;  %p2319_p6 = por %p2670_p4, %p162_p3 }
  0x1a   : > { %2680 = sst [smem:[#allocation57_spill]] %s2311_s29  ;;  %p2669_p7 = scmp.eq.s32.totalorder %s2295_s0, 1 }
  0x1b   : > { %p218_p8 = scmp.eq.s32.totalorder %s1465_s25, 1  ;;  %p1466_p9 = scmp.ge.s32.totalorder %s2190_s24, 1 }
  0x1c   : > { %p267_p10 = scmp.lt.s32.totalorder %s2190_s24, 3  ;;  %p2328_p11 = por %p2669_p7, %p156_p0 }
  0x1d   : > { %p2332_p12 = por %p218_p8, %p162_p3  ;;  %s2688_s2 = sld [smem:[#allocation61_spill]] }
  0x1e   : > { %s2683_s13 = scalar_select %p2328_p11, 1, 0 }
  0x1f   : > { %s2685_s14 = scalar_select %p2332_p12, 1, 0 }
  0x20   : > { %2684 = sst [smem:[#allocation58_spill]] %s2683_s13  ;;  %p2336_p13 = pnand %p1466_p9, %p267_p10 }
  0x21   : > { %2686 = sst [smem:[#allocation59_spill]] %s2685_s14  ;;  %s2193_s19 = smov [#allocation8]  }
  0x22   : > { %p1545_p0 = pneg %p2336_p13  ;;  %s281_s20 = sshll.u32 %s2193_s19, 4  ;;  %s282_s20 = int_to_ptr.vmem [resolvable:$true] %s281_s20 }
  0x23   : > { %s279_s18 = sshll.u32 %s2688_s2, 4  ;;  %p1573_p8 = scmp.lt.s32.totalorder %s2190_s24, 2  ;;  %s280_s18 = int_to_ptr.hbm [resolvable:$true] %s279_s18 }
  0x24   : > { %p2349_p3 = pnand %p1545_p0, %p2670_p4  ;;  %s2690_s3 = sld [smem:[#allocation62_spill]] }
  0x25   : > { %p2361_p9 = pnand %p1573_p8, %p2313_p5  ;;  %s2194_s19 = smov [#allocation11]  }
  0x26   : > { %1548 = dma.hbm_to_vmem [thread:$0]  (!%p2349_p3), %s280_s18, 128, %s282_s20, [#allocation9]  }
  0x27   : > { %s293_s2 = sshll.u32 %s2194_s19, 4  ;;  %s333_s29 = sand.u32 1, %s2190_s24   ;;  %s294_s2 = int_to_ptr.vmem [resolvable:$true] %s293_s2 }
  0x28   : > { %s335_s26 = sand.u32 1, %s2186_s23   ;;  %s1513_s28 = sshll.u32 %s2190_s24, 4 }
  0x29   : > { %s1472_s27 = sshll.u32 %s335_s26, 8  ;;  %s342_s30 = scalar_lea.hbm %s2657_s7, %s1513_s28 }
  0x2a   : > { %s291_s16 = sshll.u32 %s2690_s3, 4  ;;  %s337_s18 = scalar_lea.vmem [#allocation16], %s1472_s27  ;;  %s292_s16 = int_to_ptr.hbm [resolvable:$true] %s291_s16 }
  0x2b   : > { %1551 = dma.hbm_to_vmem [thread:$0]  (!%p2349_p3), %s292_s16, 128, %s294_s2, [#allocation12]  }
  0x2c   : > { %s345_s20 = sshll.u32 %s337_s18, 4  ;;  %s343_s21 = sshll.u32 %s342_s30, 4  ;;  %s346_s20 = int_to_ptr.vmem [resolvable:$true] %s345_s20  ;;  %s344_s21 = int_to_ptr.hbm [resolvable:$true] %s343_s21 }
  0x2d   : > { %s2692_s4 = sld [smem:[#allocation63_spill]]  ;;  %s2378_s16 = scalar_lea.sflag [#allocation9], %s333_s29 }
  0x2e   : > { %s1722_s9 = sshra.s32 %s344_s21, 4  ;;  %p1726_p10 = pneg %p2361_p9  ;;  %s1723_s9 = int_to_ptr.hbm [resolvable:$true] %s1722_s9 }
  0x2f   : > { %s1724_s11 = scalar_lea.hbm %s1723_s9, 256  ;;  %s1729_s27 = scalar_lea.hbm %s2657_s7, 512 }
  0x30   : > { %p1725_p5 = scmp.ne.s32.totalorder %s1723_s9, %s1724_s11  ;;  %p1730_p2 = scmp.lt.s32.totalorder %s1723_s9, %s2657_s7 }
  0x31   : > { %p1731_p7 = scmp.lt.s32.totalorder %s1729_s27, %s1724_s11 }
  0x32   : > { %p1727_p0 = pnand %p1726_p10, %p1725_p5 }
  0x33   : > { %s303_s2 = sshll.u32 %s2692_s4, 4  ;;  %p1732_p1 = por %p1731_p7, %p1730_p2  ;;  %s304_s2 = int_to_ptr.hbm [resolvable:$true] %s303_s2 }
  0x34   : > { %p1728_p8 = pneg %p1727_p0 }
  0x36   : > { %p1733_p4 = pnand %p1732_p1, %p1728_p8 }
  0x38   : > { %1736 = shalt.err (!%p1733_p4)
}
  0x39   : > { %s2195_s29 = smov 512   ;;  %s2196_s13 = smov 256  }
  0x3a   : > { %s2197_s18 = smov 16   ;;  %s2198_s19 = smov [#allocation13]  }
  0x3b   : > { %1561 = dma.hbm_to_vmem [thread:$0]  (!%p2361_p9), %s344_s21, 4096, %s346_s20, %s2378_s16, %s2195_s29, %s2196_s13, %s2197_s18  }
  0x3c   : > { %s305_s3 = sshll.u32 %s2198_s19, 4  ;;  %s2693_s5 = sld [smem:[#allocation64_spill]]  ;;  %s306_s3 = int_to_ptr.vmem [resolvable:$true] %s305_s3 }
  0x3d   : > { %1554 = dma.hbm_to_vmem [thread:$0]  (!%p2349_p3), %s304_s2, 128, %s306_s3, [#allocation12]  }
  0x3e   : > { %s2199_s27 = smov [#allocation14]   ;;  %s1475_s30 = sshll.u32 %s335_s26, 1 }
  0x3f   : > { %s316_s28 = sshll.u32 %s2199_s27, 4  ;;  %s2200_s4 = smov 32   ;;  %s317_s28 = int_to_ptr.vmem [resolvable:$true] %s316_s28 }
  0x40   : > { %s1476_s21 = sshll.u32 %s2190_s24, 1  ;;  %s359_s20 = scalar_lea.vmem [#allocation17], %s1475_s30 }
  0x41   : > { %s367_s13 = sshll.u32 %s359_s20, 4  ;;  %s363_s14 = scalar_lea.hbm %s2658_s8, %s1476_s21  ;;  %s368_s13 = int_to_ptr.vmem [resolvable:$true] %s367_s13 }
  0x42   : > { %s314_s11 = sshll.u32 %s2693_s5, 4  ;;  %s365_s9 = sshll.u32 %s363_s14, 4  ;;  %s315_s11 = int_to_ptr.hbm [resolvable:$true] %s314_s11  ;;  %s366_s9 = int_to_ptr.hbm [resolvable:$true] %s365_s9 }
  0x43   : > { %1557 = dma.hbm_to_vmem [thread:$0]  (!%p2349_p3), %s315_s11, 24576, %s317_s28, [#allocation15], %s2195_s29, %s2195_s29, %s2200_s4  }
  0x44   : > { %s1812_s2 = sshra.s32 %s366_s9, 4  ;;  %s1819_s25 = scalar_lea.hbm %s2658_s8, 4  ;;  %s1813_s2 = int_to_ptr.hbm [resolvable:$true] %s1812_s2 }
  0x45   : > { %s1814_s3 = scalar_lea.hbm %s1813_s2, 2  ;;  %p1820_p2 = scmp.lt.s32.totalorder %s1813_s2, %s2658_s8 }
  0x46   : > { %p1815_p4 = scmp.ne.s32.totalorder %s1813_s2, %s1814_s3  ;;  %p1821_p3 = scmp.lt.s32.totalorder %s1819_s25, %s1814_s3 }
  0x48   : > { %p1817_p7 = pnand %p1815_p4, %p1726_p10  ;;  %p1822_p5 = por %p1821_p3, %p1820_p2 }
  0x4a   : > { %p1818_p1 = pneg %p1817_p7 }
  0x4c   : > { %p1823_p0 = pnand %p1822_p5, %p1818_p1 }
  0x4e   : > { %1826 = shalt.err (!%p1823_p0)
}
  0x4f   : > { %1564 = dma.hbm_to_vmem [thread:$0]  (!%p2361_p9), %s366_s9, 32, %s368_s13, %s2378_s16  }
  0x50   : > { %376 = sbr.rel (%p2336_p13) target bundleno = 669 (0x29d), region = 48  ;;  %p2694_p10 = scmp.eq.s32.totalorder (!%p2336_p13), %s2295_s0, 0 }
  0x55   : > { %2137 = dma.done.wait (%p2694_p10), [#allocation9], 128   ;;  %p2695_p8 = pmov %p2694_p10 }
  0x57   : > { %2139 = vsyncadd (%p2695_p8), [#allocation9], 4294967168  ;;  %p2696_p4 = pmov %p2695_p8 }
  0x59   : > { %2141 = dma.done.wait (%p2696_p4), [#allocation12], 256   ;;  %p2697_p7 = pmov %p2696_p4 }
  0x5a   : > { %p2698_p1 = pmov %p2696_p4 }
  0x5b   : > { %2143 = vsyncadd (%p2697_p7), [#allocation12], 4294967040 }
  0x5c   : > { %2145 = dma.done.wait (%p2698_p1), [#allocation15], 24576   ;;  %p2699_p9 = pmov %p2698_p1 }
  0x5d   : > { %s398_s15 = sand.u32 1, %s2295_s0   ;;  %s2435_s17 = sand.u32 1, %s2182_s22  }
  0x5e   : > { %2147 = vsyncadd (%p2699_p9), [#allocation15], 4294942720  ;;  %s1482_s16 = sshll.u32 %s2435_s17, 8  ;;  %s399_s27 = scalar_lea.sflag [#allocation9], %s398_s15 }
  0x5f   : > { %s2438_s28 = scalar_lea.vmem [#allocation16], %s1482_s16 }
  0x60   : > { %2149 = dma.done.wait (%p2319_p6), %s399_s27, 4128  }
  0x61   : > { %2151 = vsyncadd (%p2319_p6), %s399_s27, 4294963168  ;;  %s1483_s30 = sshll.u32 %s2435_s17, 1  ;;  %s1484_s21 = sshll.u32 %s2435_s17, 4 }
  0x62   : > { %s2446_s20 = scalar_lea.vmem [#allocation17], %s1483_s30  ;;  %s2448_s13 = scalar_lea.vmem [#allocation18], %s1484_s21 }
  0x63   : > { %p2700_p13 = scmp.ne.s32.totalorder %s2295_s0, 0 }
  0x65   : > { %459 = sbr.rel (%p2700_p13) target bundleno = 501 (0x1f5), region = 76 }
  0x6a   : > { %s460_s18 = sld [smem:[#allocation7]]  ;;  %s2201_s19 = smov [#allocation2]   ;;  %v2471_v0 = vld [vmem:[#allocation8] sm:$0xff]  ;;  %v2473_v1 = vld [vmem:[#allocation11] sm:$0xff] }
  0x6b   : > { %s2452_s14 = sshll.u32 %s2201_s19, 4  ;;  %s1486_s9 = sld [smem:[#allocation7 + $0x1]]  ;;  %s472_s14 = int_to_ptr.vmem [resolvable:$true] %s2452_s14 }
  0x6c   : > { %s2202_s12 = smov [#allocation2 + $0x1]   ;;  %s2457_s3 = sld [smem:[#allocation7 + $0x2]] }
  0x6d   : > { %s2455_s2 = sshll.u32 %s2202_s12, 4  ;;  %s2203_s26 = smov [#allocation2 + $0x2]  }
  0x6e   : > { %2701 = sst [smem:[#allocation60_spill]] %s2455_s2  ;;  %s2460_s4 = sshll.u32 %s2203_s26, 4  ;;  %s506_s4 = int_to_ptr.vmem [resolvable:$true] %s2460_s4 }
  0x6f   : > { %s2462_s25 = sld [smem:[#allocation7 + $0x3]] }
  0x70   : > { %s461_s15 = scalar_lea.hbm %s2651_s1, %s460_s18  ;;  %s2478_s18 = scalar_lea.hbm %s2651_s1, 512 }
  0x71   : > { %s469_s16 = sshll.u32 %s461_s15, 4  ;;  %s476_s21 = scalar_lea.hbm %s2651_s1, %s1486_s9  ;;  %s470_s16 = int_to_ptr.hbm [resolvable:$true] %s469_s16 }
  0x72   : > { %s486_s19 = sshll.u32 %s476_s21, 4  ;;  %s1842_s12 = sshra.s32 %s470_s16, 4  ;;  %s1843_s12 = int_to_ptr.hbm [resolvable:$true] %s1842_s12  ;;  %s487_s19 = int_to_ptr.hbm [resolvable:$true] %s486_s19 }
  0x73   : > { %s1844_s26 = scalar_lea.hbm %s1843_s12, 1  ;;  %p1847_p2 = scmp.lt.s32.totalorder %s1843_s12, %s2651_s1 }
  0x74   : > { %p1845_p6 = scmp.ne.s32.totalorder %s1843_s12, %s1844_s26  ;;  %p1848_p3 = scmp.lt.s32.totalorder %s2478_s18, %s1844_s26 }
  0x76   : > { %p1849_p5 = por %p1848_p3, %p1847_p2 }
  0x78   : > { %p1850_p0 = pnand %p1849_p5, %p1845_p6 }
  0x7a   : > { %1853 = shalt.err (!%p1850_p0)  }
  0x7b   : > { %474 = dma.hbm_to_vmem [thread:$0]  %s470_s16, 16, %s472_s14, [#allocation5] }
  0x7c   : > { %s493_s27 = scalar_lea.hbm %s2651_s1, %s2457_s3  ;;  %s1866_s5 = sshra.s32 %s487_s19, 4  ;;  %s1867_s5 = int_to_ptr.hbm [resolvable:$true] %s1866_s5 }
  0x7d   : > { %s1868_s2 = scalar_lea.hbm %s1867_s5, 1  ;;  %p1871_p8 = scmp.lt.s32.totalorder %s1867_s5, %s2651_s1 }
  0x7e   : > { %p1869_p10 = scmp.ne.s32.totalorder %s1867_s5, %s1868_s2  ;;  %p1872_p4 = scmp.lt.s32.totalorder %s2478_s18, %s1868_s2 }
  0x80   : > { %p1873_p7 = por %p1872_p4, %p1871_p8 }
  0x82   : > { %p1874_p1 = pnand %p1873_p7, %p1869_p10 }
  0x84   : > { %1877 = shalt.err (!%p1874_p1)  }
  0x85   : > { %s2702_s14 = sld [smem:[#allocation60_spill]]  ;;  %s503_s12 = sshll.u32 %s493_s27, 4  ;;  %s504_s12 = int_to_ptr.hbm [resolvable:$true] %s503_s12 }
  0x86   : > { %s510_s29 = scalar_lea.hbm %s2651_s1, %s2462_s25  ;;  %s1890_s9 = sshra.s32 %s504_s12, 4  ;;  %s1891_s9 = int_to_ptr.hbm [resolvable:$true] %s1890_s9 }
  0x87   : > { %s520_s11 = sshll.u32 %s510_s29, 4  ;;  %s1892_s15 = scalar_lea.hbm %s1891_s9, 1  ;;  %s521_s11 = int_to_ptr.hbm [resolvable:$true] %s520_s11 }
  0x88   : > { %p1893_p9 = scmp.ne.s32.totalorder %s1891_s9, %s1892_s15  ;;  %p1895_p13 = scmp.lt.s32.totalorder %s1891_s9, %s2651_s1 }
  0x89   : > { %p1896_p6 = scmp.lt.s32.totalorder %s2478_s18, %s1892_s15 }
  0x8b   : > { %s2703_s16 = int_to_ptr.vmem [resolvable:$true] %s2702_s14  ;;  %p1897_p2 = por %p1896_p6, %p1895_p13 }
  0x8c   : > { %491 = dma.hbm_to_vmem [thread:$0]  %s487_s19, 16, %s2703_s16, [#allocation5 + $0x1] }
  0x8d   : > { %p1898_p3 = pnand %p1897_p2, %p1893_p9 }
  0x8f   : > { %1901 = shalt.err (!%p1898_p3)  }
  0x90   : > { %508 = dma.hbm_to_vmem [thread:$0]  %s504_s12, 16, %s506_s4, [#allocation5 + $0x2] }
  0x91   : > { %s2204_s25 = smov [#allocation2 + $0x3]   ;;  %s1489_s27 = sld [smem:[#allocation7 + $0x4]] }
  0x92   : > { %s522_s19 = sshll.u32 %s2204_s25, 4  ;;  %s1914_s30 = sshra.s32 %s521_s11, 4  ;;  %s523_s19 = int_to_ptr.vmem [resolvable:$true] %s522_s19  ;;  %s1915_s30 = int_to_ptr.hbm [resolvable:$true] %s1914_s30 }
  0x93   : > { %s1916_s21 = scalar_lea.hbm %s1915_s30, 1  ;;  %p1919_p0 = scmp.lt.s32.totalorder %s1915_s30, %s2651_s1 }
  0x94   : > { %p1917_p5 = scmp.ne.s32.totalorder %s1915_s30, %s1916_s21  ;;  %p1920_p10 = scmp.lt.s32.totalorder %s2478_s18, %s1916_s21 }
  0x96   : > { %p1921_p8 = por %p1920_p10, %p1919_p0 }
  0x98   : > { %p1922_p4 = pnand %p1921_p8, %p1917_p5 }
  0x9a   : > { %1925 = shalt.err (!%p1922_p4)  }
  0x9b   : > { %525 = dma.hbm_to_vmem [thread:$0]  %s521_s11, 16, %s523_s19, [#allocation5 + $0x3] }
  0x9c   : > { %s2205_s26 = smov [#allocation2 + $0x4]   ;;  %s1490_s12 = sld [smem:[#allocation7 + $0x5]] }
  0x9d   : > { %s539_s4 = sshll.u32 %s2205_s26, 4  ;;  %s2206_s3 = smov [#allocation2 + $0x5]   ;;  %s540_s4 = int_to_ptr.vmem [resolvable:$true] %s539_s4 }
  0x9e   : > { %s2508_s29 = sshll.u32 %s2206_s3, 4  ;;  %s1491_s9 = sld [smem:[#allocation7 + $0x6]]  ;;  %s557_s29 = int_to_ptr.vmem [resolvable:$true] %s2508_s29 }
  0x9f   : > { %s527_s2 = scalar_lea.hbm %s2651_s1, %s1489_s27  ;;  %s2207_s30 = smov [#allocation2 + $0x6]  }
  0xa0   : > { %s537_s25 = sshll.u32 %s527_s2, 4  ;;  %s2514_s21 = sshll.u32 %s2207_s30, 4  ;;  %s538_s25 = int_to_ptr.hbm [resolvable:$true] %s537_s25  ;;  %s574_s21 = int_to_ptr.vmem [resolvable:$true] %s2514_s21 }
  0xa1   : > { %s1938_s11 = sshra.s32 %s538_s25, 4  ;;  %s1939_s11 = int_to_ptr.hbm [resolvable:$true] %s1938_s11 }
  0xa2   : > { %s1940_s19 = scalar_lea.hbm %s1939_s11, 1  ;;  %p1943_p1 = scmp.lt.s32.totalorder %s1939_s11, %s2651_s1 }
  0xa3   : > { %p1941_p7 = scmp.ne.s32.totalorder %s1939_s11, %s1940_s19  ;;  %p1944_p9 = scmp.lt.s32.totalorder %s2478_s18, %s1940_s19 }
  0xa5   : > { %p1945_p13 = por %p1944_p9, %p1943_p1 }
  0xa7   : > { %p1946_p6 = pnand %p1945_p13, %p1941_p7 }
  0xa9   : > { %1949 = shalt.err (!%p1946_p6)  }
  0xaa   : > { %542 = dma.hbm_to_vmem [thread:$0]  %s538_s25, 16, %s540_s4, [#allocation5 + $0x4] }
  0xab   : > { %s544_s3 = scalar_lea.hbm %s2651_s1, %s1490_s12  ;;  %s561_s30 = scalar_lea.hbm %s2651_s1, %s1491_s9 }
  0xac   : > { %s554_s15 = sshll.u32 %s544_s3, 4  ;;  %s571_s14 = sshll.u32 %s561_s30, 4  ;;  %s555_s15 = int_to_ptr.hbm [resolvable:$true] %s554_s15  ;;  %s572_s14 = int_to_ptr.hbm [resolvable:$true] %s571_s14 }
  0xad   : > { %s1962_s11 = sshra.s32 %s555_s15, 4  ;;  %s1963_s11 = int_to_ptr.hbm [resolvable:$true] %s1962_s11 }
  0xae   : > { %s1964_s19 = scalar_lea.hbm %s1963_s11, 1  ;;  %p1967_p3 = scmp.lt.s32.totalorder %s1963_s11, %s2651_s1 }
  0xaf   : > { %p1965_p2 = scmp.ne.s32.totalorder %s1963_s11, %s1964_s19  ;;  %p1968_p5 = scmp.lt.s32.totalorder %s2478_s18, %s1964_s19 }
  0xb1   : > { %p1969_p0 = por %p1968_p5, %p1967_p3 }
  0xb3   : > { %p1970_p10 = pnand %p1969_p0, %p1965_p2 }
  0xb5   : > { %1973 = shalt.err (!%p1970_p10)  }
  0xb6   : > { %559 = dma.hbm_to_vmem [thread:$0]  %s555_s15, 16, %s557_s29, [#allocation5 + $0x5] }
  0xb7   : > { %s1492_s12 = sld [smem:[#allocation7 + $0x7]]  ;;  %s1986_s9 = sshra.s32 %s572_s14, 4  ;;  %s1987_s9 = int_to_ptr.hbm [resolvable:$true] %s1986_s9 }
  0xb8   : > { %s1988_s25 = scalar_lea.hbm %s1987_s9, 1  ;;  %p1991_p4 = scmp.lt.s32.totalorder %s1987_s9, %s2651_s1 }
  0xb9   : > { %p1989_p8 = scmp.ne.s32.totalorder %s1987_s9, %s1988_s25  ;;  %p1992_p7 = scmp.lt.s32.totalorder %s2478_s18, %s1988_s25 }
  0xbb   : > { %p1993_p1 = por %p1992_p7, %p1991_p4 }
  0xbd   : > { %p1994_p9 = pnand %p1993_p1, %p1989_p8 }
  0xbf   : > { %1997 = shalt.err (!%p1994_p9)  }
  0xc0   : > { %576 = dma.hbm_to_vmem [thread:$0]  %s572_s14, 16, %s574_s21, [#allocation5 + $0x6] }
  0xc1   : > { %s2208_s3 = smov [#allocation2 + $0x7]   ;;  %s578_s15 = scalar_lea.hbm %s2651_s1, %s1492_s12 }
  0xc2   : > { %s590_s5 = sshll.u32 %s2208_s3, 4  ;;  %s588_s30 = sshll.u32 %s578_s15, 4  ;;  %s591_s5 = int_to_ptr.vmem [resolvable:$true] %s590_s5  ;;  %s589_s30 = int_to_ptr.hbm [resolvable:$true] %s588_s30 }
  0xc3   : > { %s2010_s11 = sshra.s32 %s589_s30, 4  ;;  %s2011_s11 = int_to_ptr.hbm [resolvable:$true] %s2010_s11 }
  0xc4   : > { %s2012_s19 = scalar_lea.hbm %s2011_s11, 1  ;;  %p2015_p6 = scmp.lt.s32.totalorder %s2011_s11, %s2651_s1 }
  0xc5   : > { %p2013_p13 = scmp.ne.s32.totalorder %s2011_s11, %s2012_s19  ;;  %p2016_p2 = scmp.lt.s32.totalorder %s2478_s18, %s2012_s19 }
  0xc7   : > { %p2017_p3 = por %p2016_p2, %p2015_p6 }
  0xc9   : > { %p2018_p5 = pnand %p2017_p3, %p2013_p13 }
  0xcb   : > { %2021 = shalt.err (!%p2018_p5)  }
  0xcc   : > { %593 = dma.hbm_to_vmem [thread:$0]  %s589_s30, 16, %s591_s5, [#allocation5 + $0x7] }
  0xcd   : > { %2152 = dma.done.wait [#allocation5], 16 }
  0xce   : > { %2153 = vsyncadd [#allocation5], 4294967280 }
  0xcf   : > { %2154 = dma.done.wait [#allocation5 + $0x1], 16 }
  0xd0   : > { %2155 = vsyncadd [#allocation5 + $0x1], 4294967280 }
  0xd1   : > { %2156 = dma.done.wait [#allocation5 + $0x2], 16 }
  0xd2   : > { %2157 = vsyncadd [#allocation5 + $0x2], 4294967280 }
  0xd3   : > { %2158 = dma.done.wait [#allocation5 + $0x3], 16 }
  0xd4   : > { %2159 = vsyncadd [#allocation5 + $0x3], 4294967280 }
  0xd5   : > { %2160 = dma.done.wait [#allocation5 + $0x4], 16 }
  0xd6   : > { %2161 = vsyncadd [#allocation5 + $0x4], 4294967280 }
  0xd7   : > { %2162 = dma.done.wait [#allocation5 + $0x5], 16 }
  0xd8   : > { %2163 = vsyncadd [#allocation5 + $0x5], 4294967280 }
  0xd9   : > { %2164 = dma.done.wait [#allocation5 + $0x6], 16 }
  0xda   : > { %2165 = vsyncadd [#allocation5 + $0x6], 4294967280 }
  0xdb   : > { %2166 = dma.done.wait [#allocation5 + $0x7], 16 }
  0xdc   : > { %2167 = vsyncadd [#allocation5 + $0x7], 4294967280  ;;  %v680_v2 = vld [vmem:[#allocation14 + $0x1e0] sm:$0xff]  ;;  %v681_v7 = vld [vmem:[#allocation14 + $0x1e8] sm:$0xff] }
  0xdd   : > { %v808_v3 = vld [vmem:[#allocation14 + $0x5e0] sm:$0xff]  ;;  %822 = vmatpush.msra.mxu0 %v680_v2  ;;  %882 = vmatpush.msra.mxu3 %v681_v7  ;;  %v677_v11 = vld [vmem:[#allocation14 + $0x1c8] sm:$0xff] }
  0xde   : > { %v676_v4 = vld [vmem:[#allocation14 + $0x1c0] sm:$0xff]  ;;  %862 = vmatpush.msra.mxu2 %v808_v3  ;;  %v673_v15 = vld [vmem:[#allocation14 + $0x1a8] sm:$0xff]  ;;  %v682_v3 = vld [vmem:[#allocation14 + $0x1f0] sm:$0xff] }
  0xdf   : > { %v744_v5 = vld [vmem:[#allocation14 + $0x3e0] sm:$0xff]  ;;  %823 = vmatpush.msra.mxu0 %v676_v4  ;;  %883 = vmatpush.msra.mxu3 %v677_v11  ;;  %v669_v17 = vld [vmem:[#allocation14 + $0x188] sm:$0xff] }
  0xe0   : > { %v804_v6 = vld [vmem:[#allocation14 + $0x5c0] sm:$0xff]  ;;  %842 = vmatpush.msra.mxu1 %v744_v5  ;;  %v665_v21 = vld [vmem:[#allocation14 + $0x168] sm:$0xff] }
  0xe1   : > { %v672_v8 = vld [vmem:[#allocation14 + $0x1a0] sm:$0xff]  ;;  %863 = vmatpush.msra.mxu2 %v804_v6  ;;  %884 = vmatpush.msra.mxu3 %v673_v15  ;;  %v661_v25 = vld [vmem:[#allocation14 + $0x148] sm:$0xff] }
  0xe2   : > { %v740_v9 = vld [vmem:[#allocation14 + $0x3c0] sm:$0xff]  ;;  %824 = vmatpush.msra.mxu0 %v672_v8  ;;  %v657_v29 = vld [vmem:[#allocation14 + $0x128] sm:$0xff]  ;;  %v678_v8 = vld [vmem:[#allocation14 + $0x1d0] sm:$0xff] }
  0xe3   : > { %v800_v10 = vld [vmem:[#allocation14 + $0x5a0] sm:$0xff]  ;;  %843 = vmatpush.msra.mxu1 %v740_v9  ;;  %885 = vmatpush.msra.mxu3 %v669_v17  ;;  %v653_v33 = vld [vmem:[#allocation14 + $0x108] sm:$0xff]  ;;  %v746_v9 = vld [vmem:[#allocation14 + $0x3f0] sm:$0xff] }
  0xe4   : > { %v736_v12 = vld [vmem:[#allocation14 + $0x3a0] sm:$0xff]  ;;  %864 = vmatpush.msra.mxu2 %v800_v10  ;;  %v649_v37 = vld [vmem:[#allocation14 + $0xe8] sm:$0xff]  ;;  %v738_v17 = vld [vmem:[#allocation14 + $0x3b0] sm:$0xff] }
  0xe5   : > { %v668_v13 = vld [vmem:[#allocation14 + $0x180] sm:$0xff]  ;;  %844 = vmatpush.msra.mxu1 %v736_v12  ;;  %886 = vmatpush.msra.mxu3 %v665_v21  ;;  %v645_v41 = vld [vmem:[#allocation14 + $0xc8] sm:$0xff]  ;;  %v674_v12 = vld [vmem:[#allocation14 + $0x1b0] sm:$0xff] }
  0xe6   : > { %v796_v14 = vld [vmem:[#allocation14 + $0x580] sm:$0xff]  ;;  %825 = vmatpush.msra.mxu0 %v668_v13  ;;  %v641_v45 = vld [vmem:[#allocation14 + $0xa8] sm:$0xff]  ;;  %v742_v13 = vld [vmem:[#allocation14 + $0x3d0] sm:$0xff] }
  0xe7   : > { %v732_v16 = vld [vmem:[#allocation14 + $0x380] sm:$0xff]  ;;  %865 = vmatpush.msra.mxu2 %v796_v14  ;;  %887 = vmatpush.msra.mxu3 %v661_v25  ;;  %v637_v49 = vld [vmem:[#allocation14 + $0x88] sm:$0xff]  ;;  %v734_v21 = vld [vmem:[#allocation14 + $0x390] sm:$0xff] }
  0xe8   : > { %v664_v18 = vld [vmem:[#allocation14 + $0x160] sm:$0xff]  ;;  %845 = vmatpush.msra.mxu1 %v732_v16  ;;  %v633_v53 = vld [vmem:[#allocation14 + $0x68] sm:$0xff]  ;;  %v670_v16 = vld [vmem:[#allocation14 + $0x190] sm:$0xff] }
  0xe9   : > { %v792_v19 = vld [vmem:[#allocation14 + $0x560] sm:$0xff]  ;;  %826 = vmatpush.msra.mxu0 %v664_v18  ;;  %888 = vmatpush.msra.mxu3 %v657_v29  ;;  %v629_v57 = vld [vmem:[#allocation14 + $0x48] sm:$0xff]  ;;  %v730_v25 = vld [vmem:[#allocation14 + $0x370] sm:$0xff] }
  0xea   : > { %v728_v20 = vld [vmem:[#allocation14 + $0x360] sm:$0xff]  ;;  %866 = vmatpush.msra.mxu2 %v792_v19  ;;  %v625_v61 = vld [vmem:[#allocation14 + $0x28] sm:$0xff]  ;;  %v726_v29 = vld [vmem:[#allocation14 + $0x350] sm:$0xff] }
  0xeb   : > { %v660_v22 = vld [vmem:[#allocation14 + $0x140] sm:$0xff]  ;;  %846 = vmatpush.msra.mxu1 %v728_v20  ;;  %889 = vmatpush.msra.mxu3 %v653_v33  ;;  %v745_v2 = vld [vmem:[#allocation14 + $0x3e8] sm:$0xff]  ;;  %v666_v20 = vld [vmem:[#allocation14 + $0x170] sm:$0xff] }
  0xec   : > { %v788_v23 = vld [vmem:[#allocation14 + $0x540] sm:$0xff]  ;;  %827 = vmatpush.msra.mxu0 %v660_v22  ;;  %v621_v5 = vld [vmem:[#allocation14 + $0x8] sm:$0xff]  ;;  %v722_v33 = vld [vmem:[#allocation14 + $0x330] sm:$0xff] }
  0xed   : > { %v724_v24 = vld [vmem:[#allocation14 + $0x340] sm:$0xff]  ;;  %867 = vmatpush.msra.mxu2 %v788_v23  ;;  %890 = vmatpush.msra.mxu3 %v649_v37  ;;  %v741_v6 = vld [vmem:[#allocation14 + $0x3c8] sm:$0xff]  ;;  %v718_v37 = vld [vmem:[#allocation14 + $0x310] sm:$0xff] }
  0xee   : > { %v656_v26 = vld [vmem:[#allocation14 + $0x120] sm:$0xff]  ;;  %847 = vmatpush.msra.mxu1 %v724_v24  ;;  %v809_v7 = vld [vmem:[#allocation14 + $0x5e8] sm:$0xff]  ;;  %v662_v24 = vld [vmem:[#allocation14 + $0x150] sm:$0xff] }
  0xef   : > { %v784_v27 = vld [vmem:[#allocation14 + $0x520] sm:$0xff]  ;;  %828 = vmatpush.msra.mxu0 %v656_v26  ;;  %891 = vmatpush.msra.mxu3 %v645_v41  ;;  %v737_v10 = vld [vmem:[#allocation14 + $0x3a8] sm:$0xff]  ;;  %v714_v41 = vld [vmem:[#allocation14 + $0x2f0] sm:$0xff] }
  0xf0   : > { %v720_v28 = vld [vmem:[#allocation14 + $0x320] sm:$0xff]  ;;  %868 = vmatpush.msra.mxu2 %v784_v27  ;;  %v805_v11 = vld [vmem:[#allocation14 + $0x5c8] sm:$0xff] }
  0xf1   : > { %v652_v30 = vld [vmem:[#allocation14 + $0x100] sm:$0xff]  ;;  %848 = vmatpush.msra.mxu1 %v720_v28  ;;  %892 = vmatpush.msra.mxu3 %v641_v45  ;;  %v733_v14 = vld [vmem:[#allocation14 + $0x388] sm:$0xff]  ;;  %v658_v28 = vld [vmem:[#allocation14 + $0x130] sm:$0xff] }
  0xf2   : > { %v780_v31 = vld [vmem:[#allocation14 + $0x500] sm:$0xff]  ;;  %829 = vmatpush.msra.mxu0 %v652_v30  ;;  %v801_v15 = vld [vmem:[#allocation14 + $0x5a8] sm:$0xff]  ;;  %v642_v45 = vld [vmem:[#allocation14 + $0xb0] sm:$0xff] }
  0xf3   : > { %v716_v32 = vld [vmem:[#allocation14 + $0x300] sm:$0xff]  ;;  %869 = vmatpush.msra.mxu2 %v780_v31  ;;  %893 = vmatpush.msra.mxu3 %v637_v49  ;;  %v729_v18 = vld [vmem:[#allocation14 + $0x368] sm:$0xff]  ;;  %v638_v49 = vld [vmem:[#allocation14 + $0x90] sm:$0xff] }
  0xf4   : > { %v648_v34 = vld [vmem:[#allocation14 + $0xe0] sm:$0xff]  ;;  %849 = vmatpush.msra.mxu1 %v716_v32  ;;  %v797_v19 = vld [vmem:[#allocation14 + $0x588] sm:$0xff]  ;;  %v654_v32 = vld [vmem:[#allocation14 + $0x110] sm:$0xff] }
  0xf5   : > { %v776_v35 = vld [vmem:[#allocation14 + $0x4e0] sm:$0xff]  ;;  %830 = vmatpush.msra.mxu0 %v648_v34  ;;  %894 = vmatpush.msra.mxu3 %v633_v53  ;;  %v725_v22 = vld [vmem:[#allocation14 + $0x348] sm:$0xff]  ;;  %v634_v53 = vld [vmem:[#allocation14 + $0x70] sm:$0xff] }
  0xf6   : > { %v712_v36 = vld [vmem:[#allocation14 + $0x2e0] sm:$0xff]  ;;  %870 = vmatpush.msra.mxu2 %v776_v35  ;;  %v793_v23 = vld [vmem:[#allocation14 + $0x568] sm:$0xff] }
  0xf7   : > { %v644_v38 = vld [vmem:[#allocation14 + $0xc0] sm:$0xff]  ;;  %850 = vmatpush.msra.mxu1 %v712_v36  ;;  %895 = vmatpush.msra.mxu3 %v629_v57  ;;  %v721_v26 = vld [vmem:[#allocation14 + $0x328] sm:$0xff]  ;;  %v650_v36 = vld [vmem:[#allocation14 + $0xf0] sm:$0xff] }
  0xf8   : > { %v772_v39 = vld [vmem:[#allocation14 + $0x4c0] sm:$0xff]  ;;  %831 = vmatpush.msra.mxu0 %v644_v38  ;;  %v789_v27 = vld [vmem:[#allocation14 + $0x548] sm:$0xff]  ;;  %v630_v57 = vld [vmem:[#allocation14 + $0x50] sm:$0xff] }
  0xf9   : > { %v708_v40 = vld [vmem:[#allocation14 + $0x2c0] sm:$0xff]  ;;  %871 = vmatpush.msra.mxu2 %v772_v39  ;;  %896 = vmatpush.msra.mxu3 %v625_v61  ;;  %v717_v30 = vld [vmem:[#allocation14 + $0x308] sm:$0xff]  ;;  %v626_v61 = vld [vmem:[#allocation14 + $0x30] sm:$0xff] }
  0xfa   : > { %v640_v42 = vld [vmem:[#allocation14 + $0xa0] sm:$0xff]  ;;  %851 = vmatpush.msra.mxu1 %v708_v40  ;;  %v785_v31 = vld [vmem:[#allocation14 + $0x528] sm:$0xff]  ;;  %v646_v40 = vld [vmem:[#allocation14 + $0xd0] sm:$0xff] }
  0xfb   : > { %v768_v43 = vld [vmem:[#allocation14 + $0x4a0] sm:$0xff]  ;;  %832 = vmatpush.msra.mxu0 %v640_v42  ;;  %897 = vmatpush.msra.mxu3 %v621_v5  ;;  %v713_v34 = vld [vmem:[#allocation14 + $0x2e8] sm:$0xff]  ;;  %v2544_v42 = vld [vmem:[#allocation2] sm:$0xff] }
  0xfc   : > { %v704_v44 = vld [vmem:[#allocation14 + $0x2a0] sm:$0xff]  ;;  %872 = vmatpush.msra.mxu2 %v768_v43  ;;  %v781_v35 = vld [vmem:[#allocation14 + $0x508] sm:$0xff]  ;;  %898 = vmatmul.f32.vlgmr.msra.gmra.mxu3 %v2544_v42  ;;  %v747_v5 = vld [vmem:[#allocation14 + $0x3f8] sm:$0xff] }
  0xfd   : > { %v636_v46 = vld [vmem:[#allocation14 + $0x80] sm:$0xff]  ;;  %852 = vmatpush.msra.mxu1 %v704_v44  ;;  %962 = vmatpush.msrb.mxu3 %v746_v9  ;;  %v709_v38 = vld [vmem:[#allocation14 + $0x2c8] sm:$0xff]  ;;  %v806_v9 = vld [vmem:[#allocation14 + $0x5d0] sm:$0xff] }
  0xfe   : > { %v764_v47 = vld [vmem:[#allocation14 + $0x480] sm:$0xff]  ;;  %833 = vmatpush.msra.mxu0 %v636_v46  ;;  %v777_v39 = vld [vmem:[#allocation14 + $0x4e8] sm:$0xff]  ;;  %v710_v46 = vld [vmem:[#allocation14 + $0x2d0] sm:$0xff] }
  0xff   : > { %v700_v48 = vld [vmem:[#allocation14 + $0x280] sm:$0xff]  ;;  %873 = vmatpush.msra.mxu2 %v764_v47  ;;  %963 = vmatpush.msrb.mxu3 %v742_v13  ;;  %v705_v43 = vld [vmem:[#allocation14 + $0x2a8] sm:$0xff]  ;;  %v802_v13 = vld [vmem:[#allocation14 + $0x5b0] sm:$0xff] }
 0x100   : > { %v632_v50 = vld [vmem:[#allocation14 + $0x60] sm:$0xff]  ;;  %853 = vmatpush.msra.mxu1 %v700_v48  ;;  %v773_v44 = vld [vmem:[#allocation14 + $0x4c8] sm:$0xff] }
 0x101   : > { %v760_v51 = vld [vmem:[#allocation14 + $0x460] sm:$0xff]  ;;  %834 = vmatpush.msra.mxu0 %v632_v50  ;;  %964 = vmatpush.msrb.mxu3 %v738_v17  ;;  %v701_v47 = vld [vmem:[#allocation14 + $0x288] sm:$0xff]  ;;  %v706_v50 = vld [vmem:[#allocation14 + $0x2b0] sm:$0xff] }
 0x102   : > { %v696_v52 = vld [vmem:[#allocation14 + $0x260] sm:$0xff]  ;;  %874 = vmatpush.msra.mxu2 %v760_v51  ;;  %v769_v48 = vld [vmem:[#allocation14 + $0x4a8] sm:$0xff]  ;;  %v798_v17 = vld [vmem:[#allocation14 + $0x590] sm:$0xff] }
 0x103   : > { %v628_v54 = vld [vmem:[#allocation14 + $0x40] sm:$0xff]  ;;  %854 = vmatpush.msra.mxu1 %v696_v52  ;;  %965 = vmatpush.msrb.mxu3 %v734_v21  ;;  %v697_v51 = vld [vmem:[#allocation14 + $0x268] sm:$0xff]  ;;  %v794_v21 = vld [vmem:[#allocation14 + $0x570] sm:$0xff] }
 0x104   : > { %v756_v55 = vld [vmem:[#allocation14 + $0x440] sm:$0xff]  ;;  %835 = vmatpush.msra.mxu0 %v628_v54  ;;  %v765_v52 = vld [vmem:[#allocation14 + $0x488] sm:$0xff]  ;;  %v702_v54 = vld [vmem:[#allocation14 + $0x290] sm:$0xff] }
 0x105   : > { %v692_v56 = vld [vmem:[#allocation14 + $0x240] sm:$0xff]  ;;  %875 = vmatpush.msra.mxu2 %v756_v55  ;;  %966 = vmatpush.msrb.mxu3 %v730_v25  ;;  %v693_v55 = vld [vmem:[#allocation14 + $0x248] sm:$0xff]  ;;  %v790_v25 = vld [vmem:[#allocation14 + $0x550] sm:$0xff] }
 0x106   : > { %v624_v58 = vld [vmem:[#allocation14 + $0x20] sm:$0xff]  ;;  %855 = vmatpush.msra.mxu1 %v692_v56  ;;  %v761_v56 = vld [vmem:[#allocation14 + $0x468] sm:$0xff] }
 0x107   : > { %v752_v59 = vld [vmem:[#allocation14 + $0x420] sm:$0xff]  ;;  %836 = vmatpush.msra.mxu0 %v624_v58  ;;  %967 = vmatpush.msrb.mxu3 %v726_v29  ;;  %v698_v58 = vld [vmem:[#allocation14 + $0x270] sm:$0xff] }
 0x108   : > { %v688_v60 = vld [vmem:[#allocation14 + $0x220] sm:$0xff]  ;;  %876 = vmatpush.msra.mxu2 %v752_v59  ;;  %v689_v59 = vld [vmem:[#allocation14 + $0x228] sm:$0xff]  ;;  %v786_v29 = vld [vmem:[#allocation14 + $0x530] sm:$0xff] }
 0x109   : > { %v620_v62 = vld [vmem:[#allocation14] sm:$0xff]  ;;  %856 = vmatpush.msra.mxu1 %v688_v60  ;;  %968 = vmatpush.msrb.mxu3 %v722_v33  ;;  %v757_v60 = vld [vmem:[#allocation14 + $0x448] sm:$0xff]  ;;  %v782_v33 = vld [vmem:[#allocation14 + $0x510] sm:$0xff] }
 0x10a   : > { %v748_v63 = vld [vmem:[#allocation14 + $0x400] sm:$0xff]  ;;  %837 = vmatpush.msra.mxu0 %v620_v62  ;;  %v694_v62 = vld [vmem:[#allocation14 + $0x250] sm:$0xff] }
 0x10b   : > { %v684_v4 = vld [vmem:[#allocation14 + $0x200] sm:$0xff]  ;;  %877 = vmatpush.msra.mxu2 %v748_v63  ;;  %969 = vmatpush.msrb.mxu3 %v718_v37  ;;  %v685_v63 = vld [vmem:[#allocation14 + $0x208] sm:$0xff]  ;;  %v778_v37 = vld [vmem:[#allocation14 + $0x4f0] sm:$0xff] }
 0x10c   : > { %902 = vmatpush.msrb.mxu0 %v745_v2  ;;  %857 = vmatpush.msra.mxu1 %v684_v4  ;;  %v753_v2 = vld [vmem:[#allocation14 + $0x428] sm:$0xff]  ;;  %v690_v4 = vld [vmem:[#allocation14 + $0x230] sm:$0xff] }
 0x10d   : > { %942 = vmatpush.msrb.mxu2 %v682_v3  ;;  %970 = vmatpush.msrb.mxu3 %v714_v41  ;;  %v622_v3 = vld [vmem:[#allocation14 + $0x10] sm:$0xff] }
 0x10e   : > { %903 = vmatpush.msrb.mxu0 %v741_v6  ;;  %922 = vmatpush.msrb.mxu1 %v809_v7  ;;  %v810_v6 = vld [vmem:[#allocation14 + $0x5f0] sm:$0xff]  ;;  %v749_v7 = vld [vmem:[#allocation14 + $0x408] sm:$0xff] }
 0x10f   : > { %943 = vmatpush.msrb.mxu2 %v678_v8  ;;  %838 = vmatmul.f32.vlgmr.msra.gmra.mxu0 %v2544_v42  ;;  %v686_v8 = vld [vmem:[#allocation14 + $0x210] sm:$0xff] }
 0x110   : > { %904 = vmatpush.msrb.mxu0 %v737_v10  ;;  %923 = vmatpush.msrb.mxu1 %v805_v11  ;;  %v743_v10 = vld [vmem:[#allocation14 + $0x3d8] sm:$0xff]  ;;  %v774_v41 = vld [vmem:[#allocation14 + $0x4d0] sm:$0xff] }
 0x111   : > { %944 = vmatpush.msrb.mxu2 %v674_v12  ;;  %971 = vmatpush.msrb.mxu3 %v710_v46  ;;  %v811_v11 = vld [vmem:[#allocation14 + $0x5f8] sm:$0xff]  ;;  %v770_v46 = vld [vmem:[#allocation14 + $0x4b0] sm:$0xff] }
 0x112   : > { %905 = vmatpush.msrb.mxu0 %v733_v14  ;;  %924 = vmatpush.msrb.mxu1 %v801_v15  ;;  %v683_v12 = vld [vmem:[#allocation14 + $0x1f8] sm:$0xff] }
 0x113   : > { %945 = vmatpush.msrb.mxu2 %v670_v16  ;;  %858 = vmatmul.f32.vlgmr.msra.gmra.mxu1 %v2471_v0  ;;  %v739_v14 = vld [vmem:[#allocation14 + $0x3b8] sm:$0xff] }
 0x114   : > { %906 = vmatpush.msrb.mxu0 %v729_v18  ;;  %925 = vmatpush.msrb.mxu1 %v797_v19  ;;  %v807_v15 = vld [vmem:[#allocation14 + $0x5d8] sm:$0xff] }
 0x115   : > { %946 = vmatpush.msrb.mxu2 %v666_v20  ;;  %972 = vmatpush.msrb.mxu3 %v706_v50  ;;  %v679_v16 = vld [vmem:[#allocation14 + $0x1d8] sm:$0xff] }
 0x116   : > { %907 = vmatpush.msrb.mxu0 %v725_v22  ;;  %926 = vmatpush.msrb.mxu1 %v793_v23  ;;  %v735_v18 = vld [vmem:[#allocation14 + $0x398] sm:$0xff] }
 0x117   : > { %947 = vmatpush.msrb.mxu2 %v662_v24  ;;  %973 = vmatpush.msrb.mxu3 %v702_v54  ;;  %v803_v19 = vld [vmem:[#allocation14 + $0x5b8] sm:$0xff] }
 0x118   : > { %908 = vmatpush.msrb.mxu0 %v721_v26  ;;  %927 = vmatpush.msrb.mxu1 %v789_v27  ;;  %v675_v20 = vld [vmem:[#allocation14 + $0x1b8] sm:$0xff] }
 0x119   : > { %948 = vmatpush.msrb.mxu2 %v658_v28  ;;  %974 = vmatpush.msrb.mxu3 %v698_v58  ;;  %v731_v22 = vld [vmem:[#allocation14 + $0x378] sm:$0xff] }
 0x11a   : > { %909 = vmatpush.msrb.mxu0 %v717_v30  ;;  %928 = vmatpush.msrb.mxu1 %v785_v31  ;;  %v799_v23 = vld [vmem:[#allocation14 + $0x598] sm:$0xff] }
 0x11b   : > { %949 = vmatpush.msrb.mxu2 %v654_v32  ;;  %975 = vmatpush.msrb.mxu3 %v694_v62  ;;  %v671_v24 = vld [vmem:[#allocation14 + $0x198] sm:$0xff] }
 0x11c   : > { %910 = vmatpush.msrb.mxu0 %v713_v34  ;;  %929 = vmatpush.msrb.mxu1 %v781_v35  ;;  %v727_v26 = vld [vmem:[#allocation14 + $0x358] sm:$0xff] }
 0x11d   : > { %950 = vmatpush.msrb.mxu2 %v650_v36  ;;  %976 = vmatpush.msrb.mxu3 %v690_v4  ;;  %v795_v27 = vld [vmem:[#allocation14 + $0x578] sm:$0xff] }
 0x11e   : > { %878 = vmatmul.f32.vlgmr.msra.gmra.mxu2 %v2473_v1  ;;  %911 = vmatpush.msrb.mxu0 %v709_v38  ;;  %v667_v28 = vld [vmem:[#allocation14 + $0x178] sm:$0xff] }
 0x11f   : > { %930 = vmatpush.msrb.mxu1 %v777_v39  ;;  %951 = vmatpush.msrb.mxu2 %v646_v40  ;;  %v723_v30 = vld [vmem:[#allocation14 + $0x338] sm:$0xff] }
 0x120   : > { %912 = vmatpush.msrb.mxu0 %v705_v43  ;;  %977 = vmatpush.msrb.mxu3 %v686_v8  ;;  %v791_v31 = vld [vmem:[#allocation14 + $0x558] sm:$0xff] }
 0x121   : > { %931 = vmatpush.msrb.mxu1 %v773_v44  ;;  %952 = vmatpush.msrb.mxu2 %v642_v45  ;;  %v663_v32 = vld [vmem:[#allocation14 + $0x158] sm:$0xff] }
 0x122   : > { %913 = vmatpush.msrb.mxu0 %v701_v47  ;;  %1042 = vmatpush.msra.mxu3 %v811_v11  ;;  %v719_v34 = vld [vmem:[#allocation14 + $0x318] sm:$0xff] }
 0x123   : > { %932 = vmatpush.msrb.mxu1 %v769_v48  ;;  %953 = vmatpush.msrb.mxu2 %v638_v49  ;;  %v787_v35 = vld [vmem:[#allocation14 + $0x538] sm:$0xff]  ;;  %v766_v49 = vld [vmem:[#allocation14 + $0x490] sm:$0xff] }
 0x124   : > { %914 = vmatpush.msrb.mxu0 %v697_v51  ;;  %1043 = vmatpush.msra.mxu3 %v807_v15  ;;  %v659_v36 = vld [vmem:[#allocation14 + $0x138] sm:$0xff] }
 0x125   : > { %933 = vmatpush.msrb.mxu1 %v765_v52  ;;  %954 = vmatpush.msrb.mxu2 %v634_v53  ;;  %v715_v38 = vld [vmem:[#allocation14 + $0x2f8] sm:$0xff]  ;;  %v762_v53 = vld [vmem:[#allocation14 + $0x470] sm:$0xff] }
 0x126   : > { %915 = vmatpush.msrb.mxu0 %v693_v55  ;;  %1044 = vmatpush.msra.mxu3 %v803_v19  ;;  %v783_v39 = vld [vmem:[#allocation14 + $0x518] sm:$0xff] }
 0x127   : > { %934 = vmatpush.msrb.mxu1 %v761_v56  ;;  %955 = vmatpush.msrb.mxu2 %v630_v57  ;;  %v655_v40 = vld [vmem:[#allocation14 + $0x118] sm:$0xff]  ;;  %v758_v57 = vld [vmem:[#allocation14 + $0x450] sm:$0xff] }
 0x128   : > { %916 = vmatpush.msrb.mxu0 %v689_v59  ;;  %1045 = vmatpush.msra.mxu3 %v799_v23  ;;  %v711_v43 = vld [vmem:[#allocation14 + $0x2d8] sm:$0xff] }
 0x129   : > { %935 = vmatpush.msrb.mxu1 %v757_v60  ;;  %956 = vmatpush.msrb.mxu2 %v626_v61  ;;  %v779_v44 = vld [vmem:[#allocation14 + $0x4f8] sm:$0xff]  ;;  %v754_v61 = vld [vmem:[#allocation14 + $0x430] sm:$0xff] }
 0x12a   : > { %917 = vmatpush.msrb.mxu0 %v685_v63  ;;  %1046 = vmatpush.msra.mxu3 %v795_v27  ;;  %v651_v45 = vld [vmem:[#allocation14 + $0xf8] sm:$0xff] }
 0x12b   : > { %936 = vmatpush.msrb.mxu1 %v753_v2  ;;  %957 = vmatpush.msrb.mxu2 %v622_v3  ;;  %v707_v47 = vld [vmem:[#allocation14 + $0x2b8] sm:$0xff]  ;;  %v750_v3 = vld [vmem:[#allocation14 + $0x410] sm:$0xff] }
 0x12c   : > { %918 = vmatmul.f32.vlgmr.msrb.gmra.mxu0 %v2471_v0  ;;  %1047 = vmatpush.msra.mxu3 %v791_v31  ;;  %v775_v48 = vld [vmem:[#allocation14 + $0x4d8] sm:$0xff] }
 0x12d   : > { %1022 = vmatpush.msra.mxu2 %v747_v5  ;;  %982 = vmatpush.msra.mxu0 %v810_v6  ;;  %v647_v50 = vld [vmem:[#allocation14 + $0xd8] sm:$0xff] }
 0x12e   : > { %937 = vmatpush.msrb.mxu1 %v749_v7  ;;  %1048 = vmatpush.msra.mxu3 %v787_v35  ;;  %v703_v51 = vld [vmem:[#allocation14 + $0x298] sm:$0xff] }
 0x12f   : > { %938 = vmatmul.f32.vlgmr.msrb.gmra.mxu1 %v2473_v1  ;;  %983 = vmatpush.msra.mxu0 %v806_v9  ;;  %v771_v52 = vld [vmem:[#allocation14 + $0x4b8] sm:$0xff] }
 0x130   : > { %1023 = vmatpush.msra.mxu2 %v743_v10  ;;  %1002 = vmatpush.msra.mxu1 %v683_v12  ;;  %v643_v54 = vld [vmem:[#allocation14 + $0xb8] sm:$0xff]  ;;  %v812_v10 = vld [vmem:[%s2656_s6] sm:$0xf] }
 0x131   : > { %984 = vmatpush.msra.mxu0 %v802_v13  ;;  %1049 = vmatpush.msra.mxu3 %v783_v39  ;;  %v699_v55 = vld [vmem:[#allocation14 + $0x278] sm:$0xff]  ;;  %v814_v11 = vperm.slane %v812_v10, 0 }
 0x132   : > { %1024 = vmatpush.msra.mxu2 %v739_v14  ;;  %1003 = vmatpush.msra.mxu1 %v679_v16  ;;  %v767_v56 = vld [vmem:[#allocation14 + $0x498] sm:$0xff] }
 0x133   : > { %985 = vmatpush.msra.mxu0 %v798_v17  ;;  %1050 = vmatpush.msra.mxu3 %v779_v44  ;;  %v639_v58 = vld [vmem:[#allocation14 + $0x98] sm:$0xff] }
 0x134   : > { %1025 = vmatpush.msra.mxu2 %v735_v18  ;;  %1004 = vmatpush.msra.mxu1 %v675_v20  ;;  %v695_v59 = vld [vmem:[#allocation14 + $0x258] sm:$0xff]  ;;  %v815_v18 = vperm.slane %v812_v10, 1 }
 0x135   : > { %986 = vmatpush.msra.mxu0 %v794_v21  ;;  %1051 = vmatpush.msra.mxu3 %v775_v48  ;;  %v763_v60 = vld [vmem:[#allocation14 + $0x478] sm:$0xff] }
 0x136   : > { %1026 = vmatpush.msra.mxu2 %v731_v22  ;;  %1005 = vmatpush.msra.mxu1 %v671_v24  ;;  %v635_v62 = vld [vmem:[#allocation14 + $0x78] sm:$0xff] }
 0x137   : > { %987 = vmatpush.msra.mxu0 %v790_v25  ;;  %958 = vmatmul.f32.vlgmr.msrb.gmra.mxu2 %v2544_v42  ;;  %v691_v63 = vld [vmem:[#allocation14 + $0x238] sm:$0xff] }
 0x138   : > { %1027 = vmatpush.msra.mxu2 %v727_v26  ;;  %1006 = vmatpush.msra.mxu1 %v667_v28  ;;  %v759_v2 = vld [vmem:[#allocation14 + $0x458] sm:$0xff] }
 0x139   : > { %988 = vmatpush.msra.mxu0 %v786_v29  ;;  %1052 = vmatpush.msra.mxu3 %v771_v52  ;;  %v631_v4 = vld [vmem:[#allocation14 + $0x58] sm:$0xff] }
 0x13a   : > { %1028 = vmatpush.msra.mxu2 %v723_v30  ;;  %1007 = vmatpush.msra.mxu1 %v663_v32  ;;  %v687_v5 = vld [vmem:[#allocation14 + $0x218] sm:$0xff] }
 0x13b   : > { %989 = vmatpush.msra.mxu0 %v782_v33  ;;  %978 = vmatmul.f32.vlgmr.msrb.gmra.mxu3 %v2471_v0  ;;  %v755_v6 = vld [vmem:[#allocation14 + $0x438] sm:$0xff]  ;;  %v816_v33 = vperm.slane %v812_v10, 2 }
 0x13c   : > { %1029 = vmatpush.msra.mxu2 %v719_v34  ;;  %1008 = vmatpush.msra.mxu1 %v659_v36  ;;  %v627_v7 = vld [vmem:[#allocation14 + $0x38] sm:$0xff] }
 0x13d   : > { %990 = vmatpush.msra.mxu0 %v778_v37  ;;  %1053 = vmatpush.msra.mxu3 %v767_v56  ;;  %v751_v8 = vld [vmem:[#allocation14 + $0x418] sm:$0xff] }
 0x13e   : > { %1030 = vmatpush.msra.mxu2 %v715_v38  ;;  %1009 = vmatpush.msra.mxu1 %v655_v40  ;;  %v623_v9 = vld [vmem:[#allocation14 + $0x18] sm:$0xff] }
 0x13f   : > { %991 = vmatpush.msra.mxu0 %v774_v41  ;;  %1054 = vmatpush.msra.mxu3 %v763_v60 }
 0x140   : > { %1031 = vmatpush.msra.mxu2 %v711_v43  ;;  %1010 = vmatpush.msra.mxu1 %v651_v45 }
 0x141   : > { %992 = vmatpush.msra.mxu0 %v770_v46  ;;  %1055 = vmatpush.msra.mxu3 %v759_v2 }
 0x142   : > { %1032 = vmatpush.msra.mxu2 %v707_v47  ;;  %1011 = vmatpush.msra.mxu1 %v647_v50  ;;  %v817_v47 = vperm.slane %v812_v10, 3 }
 0x143   : > { %993 = vmatpush.msra.mxu0 %v766_v49  ;;  %1056 = vmatpush.msra.mxu3 %v755_v6 }
 0x144   : > { %1033 = vmatpush.msra.mxu2 %v703_v51  ;;  %1012 = vmatpush.msra.mxu1 %v643_v54 }
 0x145   : > { %994 = vmatpush.msra.mxu0 %v762_v53  ;;  %1057 = vmatpush.msra.mxu3 %v751_v8 }
 0x146   : > { %1034 = vmatpush.msra.mxu2 %v699_v55  ;;  %1013 = vmatpush.msra.mxu1 %v639_v58 }
 0x147   : > { %995 = vmatpush.msra.mxu0 %v758_v57  ;;  %1058 = vmatmul.f32.vlgmr.msra.gmra.mxu3 %v2473_v1 }
 0x148   : > { %1035 = vmatpush.msra.mxu2 %v695_v59  ;;  %1014 = vmatpush.msra.mxu1 %v635_v62  ;;  %v1120_v59 = vld [vmem:[#allocation13] sm:$0xff] }
 0x149   : > { %996 = vmatpush.msra.mxu0 %v754_v61 }
 0x14a   : > { %1036 = vmatpush.msra.mxu2 %v691_v63  ;;  %1015 = vmatpush.msra.mxu1 %v631_v4 }
 0x14b   : > { %997 = vmatpush.msra.mxu0 %v750_v3 }
 0x14c   : > { %1037 = vmatpush.msra.mxu2 %v687_v5  ;;  %998 = vmatmul.f32.vlgmr.msra.gmra.mxu0 %v2473_v1 }
 0x14d   : > { %1038 = vmatmul.f32.vlgmr.msra.gmra.mxu2 %v2471_v0  ;;  %1016 = vmatpush.msra.mxu1 %v627_v7 }
 0x14f   : > { %1017 = vmatpush.msra.mxu1 %v623_v9 }
 0x150   : > { %1018 = vmatmul.f32.vlgmr.msra.gmra.mxu1 %v2544_v42 }
 0x17f   : > { %v899_v19 = vpop.f32.mrf.mxu3 }
 0x180   : > { %v900_v20 = vadd.f32 %v899_v19, %v815_v18 }
 0x18c   : > { %v839_v12 = vpop.f32.mrf.mxu0 }
 0x18d   : > { %v840_v13 = vadd.f32 %v839_v12, %v814_v11 }
 0x190   : > { %v859_v14 = vpop.f32.mrf.mxu1 }
 0x191   : > { %v860_v15 = vadd.f32 %v859_v14, %v840_v13 }
 0x1a1   : > { %v879_v16 = vpop.f32.mrf.mxu2 }
 0x1a2   : > { %v880_v17 = vadd.f32 %v879_v16, %v860_v15 }
 0x1a4   : > { %v1493_v0 = vmul.f32 -1.442695, %v880_v17 }
 0x1a6   : > { %1634 = vpow2.f32 %v1493_v0 }
 0x1a9   : > { %v919_v21 = vpop.f32.mrf.mxu0 }
 0x1aa   : > { %v920_v1 = vadd.f32 %v919_v21, %v900_v20 }
 0x1ac   : > { %v939_v22 = vpop.f32.mrf.mxu1  ;;  %v1635_v24 = vpop.eup %1634 }
 0x1ad   : > { %v940_v42 = vadd.f32 %v939_v22, %v920_v1  ;;  %v1065_v25 = vadd.f32 1.0, %v1635_v24 }
 0x1af   : > { %v1494_v23 = vmul.f32 -1.442695, %v940_v42  ;;  %vm1071_vm0 = vweird.f32 %v1065_v25  ;;  %v1077_v46 = vand.u32 2147483648, %v1065_v25  ;;  %v1075_v50 = vand.u32 2147483647, %v1065_v25 }
 0x1b1   : > { %1636 = vpow2.f32 %v1494_v23  ;;  %v1078_v55 = vor.u32 1.1754944e-38, %v1077_v46  ;;  %vm1076_vm6 = vcmp.eq.f32.partialorder %v1075_v50, 8.507059e+37 }
 0x1b2   : > { %1638 = vrcp.f32 %v1065_v25 }
 0x1b7   : > { %v1637_v26 = vpop.eup %1636 }
 0x1b8   : > { %v1084_v27 = vadd.f32 1.0, %v1637_v26  ;;  %v1639_v28 = vpop.eup %1638 }
 0x1b9   : > { %v1067_v30 = vmul.f32 %v1639_v28, %v1065_v25  ;;  %vm1072_vm1 = vweird.f32 %v1639_v28 }
 0x1ba   : > { %1640 = vrcp.f32 %v1084_v27  ;;  %v959_v35 = vpop.f32.mrf.mxu2  ;;  %vm1090_vm2 = vweird.f32 %v1084_v27  ;;  %v1096_v44 = vand.u32 2147483648, %v1084_v27  ;;  %vm2561_vm4 = vmor %vm1071_vm0, %vm1072_vm1  ;;  %v1094_v51 = vand.u32 2147483647, %v1084_v27 }
 0x1bb   : > { %v1068_v34 = vsub.f32 1.0, %v1067_v30  ;;  %v960_v37 = vadd.f32 %v959_v35, %v816_v33 }
 0x1bc   : > { %v1097_v54 = vor.u32 1.1754944e-38, %v1096_v44  ;;  %vm1095_vm7 = vcmp.eq.f32.partialorder %v1094_v51, 8.507059e+37 }
 0x1bd   : > { %v1069_v39 = vmul.f32 %v1639_v28, %v1068_v34 }
 0x1be   : > { %v979_v38 = vpop.f32.mrf.mxu3 }
 0x1bf   : > { %v980_v40 = vadd.f32 %v979_v38, %v960_v37  ;;  %v1070_v48 = vadd.f32 %v1639_v28, %v1069_v39 }
 0x1c0   : > { %v1641_v29 = vpop.eup %1640 }
 0x1c1   : > { %v1086_v31 = vmul.f32 %v1641_v29, %v1084_v27  ;;  %vm1091_vm3 = vweird.f32 %v1641_v29  ;;  %v1074_v57 = vsel %vm2561_vm4, %v1639_v28, %v1070_v48 }
 0x1c2   : > { %vm1092_vm5 = vmor %vm1090_vm2, %vm1091_vm3  ;;  %v1079_v63 = vsel %vm1076_vm6, %v1078_v55, %v1074_v57 }
 0x1c3   : > { %v1087_v32 = vsub.f32 1.0, %v1086_v31 }
 0x1c5   : > { %v1088_v36 = vmul.f32 %v1641_v29, %v1087_v32 }
 0x1c7   : > { %v1089_v43 = vadd.f32 %v1641_v29, %v1088_v36 }
 0x1c9   : > { %v999_v41 = vpop.f32.mrf.mxu0  ;;  %v1093_v52 = vsel %vm1092_vm5, %v1641_v29, %v1089_v43 }
 0x1ca   : > { %v1000_v45 = vadd.f32 %v999_v41, %v980_v40  ;;  %v1098_v58 = vsel %vm1095_vm7, %v1097_v54, %v1093_v52  ;;  %v1059_v2 = vpop.f32.mrf.mxu3 }
 0x1cb   : > { %v1121_v3 = vmul.f32 %v1120_v59, %v1098_v58 }
 0x1cc   : > { %1642 = vtanh.f32 %v1000_v45 }
 0x1cd   : > { %v1019_v53 = vpop.f32.mrf.mxu1 }
 0x1ce   : > { %v1020_v56 = vadd.f32 %v1019_v53, %v817_v47 }
 0x1d0   : > { %v1039_v60 = vpop.f32.mrf.mxu2 }
 0x1d1   : > { %v1040_v61 = vadd.f32 %v1039_v60, %v1020_v56 }
 0x1d2   : > { %v1643_v62 = vpop.eup %1642 }
 0x1d3   : > { %v1122_v4 = vmul.f32 %v1643_v62, %v1079_v63  ;;  %v1060_v5 = vadd.f32 %v1059_v2, %v1040_v61 }
 0x1d5   : > { %v1123_v6 = vadd.f32 %v1122_v4, %v1121_v3  ;;  %v1495_v7 = vmul.f32 -1.442695, %v1060_v5 }
 0x1d7   : > { %1128 = vst [vmem:[#allocation21] sm:$0xff] %v1123_v6  ;;  %1644 = vpow2.f32 %v1495_v7 }
 0x1dd   : > { %v1645_v8 = vpop.eup %1644 }
 0x1de   : > { %v1104_v9 = vadd.f32 1.0, %v1645_v8 }
 0x1e0   : > { %1646 = vrcp.f32 %v1104_v9  ;;  %v1116_v13 = vand.u32 2147483648, %v1104_v9  ;;  %v1114_v15 = vand.u32 2147483647, %v1104_v9  ;;  %vm1110_vm9 = vweird.f32 %v1104_v9 }
 0x1e1   : > { %1648 = vtanh.f32 %v1123_v6 }
 0x1e2   : > { %v1117_v17 = vor.u32 1.1754944e-38, %v1116_v13  ;;  %vm1115_vm11 = vcmp.eq.f32.partialorder %v1114_v15, 8.507059e+37 }
 0x1e6   : > { %v1647_v10 = vpop.eup %1646 }
 0x1e7   : > { %v1106_v11 = vmul.f32 %v1647_v10, %v1104_v9  ;;  %vm1111_vm8 = vweird.f32 %v1647_v10  ;;  %v1649_v0 = vpop.eup %1648 }
 0x1e8   : > { %vm1112_vm10 = vmor %vm1110_vm9, %vm1111_vm8 }
 0x1e9   : > { %v1107_v12 = vsub.f32 1.0, %v1106_v11 }
 0x1eb   : > { %v1108_v14 = vmul.f32 %v1647_v10, %v1107_v12 }
 0x1ed   : > { %v1109_v16 = vadd.f32 %v1647_v10, %v1108_v14 }
 0x1ef   : > { %v1113_v18 = vsel %vm1112_vm10, %v1647_v10, %v1109_v16 }
 0x1f0   : > { %v1118_v19 = vsel %vm1115_vm11, %v1117_v17, %v1113_v18 }
 0x1f1   : > { %v1125_v20 = vmul.f32 %v1649_v0, %v1118_v19 }
 0x1f3   : > { %1126 = vst [vmem:[#allocation4] sm:$0xff] %v1125_v20 }
 0x1f4   : > { %1127 = vst [vmem:[#allocation19] sm:$0xff] %v1125_v20 }
 0x1f5 PF: > { %v1160_v21 = vld [vmem:[%s2438_s28 + $0xf0] sm:$0xff]  ;;  %v1161_v1 = vld [vmem:[%s2438_s28 + $0xf8] sm:$0xff]  ;;  %v1158_v22 = vld [vmem:[%s2438_s28 + $0xe0] sm:$0xff]  ;;  %s2209_s14 = smov [#allocation19]   ;;  %s1238_s27 = sshll.u32 %s2660_s10, 4  ;;  %s1239_s27 = int_to_ptr.hbm [resolvable:$true] %s1238_s27 }
 0x1f6   : > { %1168 = vmatpush.msra.mxu0 %v1160_v21  ;;  %1188 = vmatpush.msra.mxu1 %v1161_v1  ;;  %v1159_v42 = vld [vmem:[%s2438_s28 + $0xe8] sm:$0xff]  ;;  %v1156_v23 = vld [vmem:[%s2438_s28 + $0xd0] sm:$0xff]  ;;  %v1157_v24 = vld [vmem:[%s2438_s28 + $0xd8] sm:$0xff]  ;;  %s1236_s12 = sshll.u32 %s2209_s14, 4  ;;  %p2706_p0 = scmp.eq.s32.totalorder %s2295_s0, 1  ;;  %s1237_s12 = int_to_ptr.vmem [resolvable:$true] %s1236_s12 }
 0x1f7   : > { %v1154_v25 = vld [vmem:[%s2438_s28 + $0xc0] sm:$0xff]  ;;  %v1155_v26 = vld [vmem:[%s2438_s28 + $0xc8] sm:$0xff]  ;;  %v1152_v27 = vld [vmem:[%s2438_s28 + $0xb0] sm:$0xff]  ;;  %s2707_s3 = sld [smem:[#allocation66_spill]]  ;;  %s2210_s2 = smov [#allocation21]  }
 0x1f8   : > { %1169 = vmatpush.msra.mxu0 %v1158_v22  ;;  %1189 = vmatpush.msra.mxu1 %v1159_v42  ;;  %v1153_v28 = vld [vmem:[%s2438_s28 + $0xb8] sm:$0xff]  ;;  %v1150_v29 = vld [vmem:[%s2438_s28 + $0xa0] sm:$0xff]  ;;  %v1151_v30 = vld [vmem:[%s2438_s28 + $0xa8] sm:$0xff]  ;;  %1537 = dma.vmem_to_hbm [thread:$0]  (%p2706_p0), %s1237_s12, 128, %s1239_s27, [#allocation20]  }
 0x1f9   : > { %v1148_v31 = vld [vmem:[%s2438_s28 + $0x90] sm:$0xff]  ;;  %v1149_v32 = vld [vmem:[%s2438_s28 + $0x98] sm:$0xff]  ;;  %v1146_v33 = vld [vmem:[%s2438_s28 + $0x80] sm:$0xff]  ;;  %s1248_s29 = sshll.u32 %s2210_s2, 4  ;;  %p2708_p10 = pmov %p2706_p0  ;;  %s1249_s29 = int_to_ptr.vmem [resolvable:$true] %s1248_s29 }
 0x1fa   : > { %1170 = vmatpush.msra.mxu0 %v1156_v23  ;;  %1190 = vmatpush.msra.mxu1 %v1157_v24  ;;  %v1147_v34 = vld [vmem:[%s2438_s28 + $0x88] sm:$0xff]  ;;  %v1144_v35 = vld [vmem:[%s2438_s28 + $0x70] sm:$0xff]  ;;  %v1145_v36 = vld [vmem:[%s2438_s28 + $0x78] sm:$0xff]  ;;  %s1514_s15 = sshll.u32 %s2295_s0, 4  ;;  %s2709_s19 = sld [smem:[#allocation65_spill]] }
 0x1fb   : > { %v1142_v37 = vld [vmem:[%s2438_s28 + $0x60] sm:$0xff]  ;;  %v1143_v38 = vld [vmem:[%s2438_s28 + $0x68] sm:$0xff]  ;;  %v1140_v39 = vld [vmem:[%s2438_s28 + $0x50] sm:$0xff]  ;;  %s1224_s18 = sshll.u32 %s2448_s13, 4  ;;  %s1211_s14 = scalar_lea.sflag [#allocation10], %s2435_s17  ;;  %s1225_s18 = int_to_ptr.vmem [resolvable:$true] %s1224_s18 }
 0x1fc   : > { %1171 = vmatpush.msra.mxu0 %v1154_v25  ;;  %1191 = vmatpush.msra.mxu1 %v1155_v26  ;;  %v1141_v40 = vld [vmem:[%s2438_s28 + $0x58] sm:$0xff]  ;;  %v1138_v41 = vld [vmem:[%s2438_s28 + $0x40] sm:$0xff]  ;;  %v1139_v43 = vld [vmem:[%s2438_s28 + $0x48] sm:$0xff] }
 0x1fd   : > { %v1136_v44 = vld [vmem:[%s2438_s28 + $0x30] sm:$0xff]  ;;  %v1137_v45 = vld [vmem:[%s2438_s28 + $0x38] sm:$0xff]  ;;  %v1134_v46 = vld [vmem:[%s2438_s28 + $0x20] sm:$0xff]  ;;  %s1250_s5 = sshll.u32 %s2707_s3, 4  ;;  %s1251_s5 = int_to_ptr.hbm [resolvable:$true] %s1250_s5 }
 0x1fe   : > { %1172 = vmatpush.msra.mxu0 %v1152_v27  ;;  %1192 = vmatpush.msra.mxu1 %v1153_v28  ;;  %v1135_v47 = vld [vmem:[%s2438_s28 + $0x28] sm:$0xff]  ;;  %v1132_v48 = vld [vmem:[%s2438_s28 + $0x10] sm:$0xff]  ;;  %v1133_v49 = vld [vmem:[%s2438_s28 + $0x18] sm:$0xff]  ;;  %1539 = dma.vmem_to_hbm [thread:$0]  (%p2708_p10), %s1249_s29, 128, %s1251_s5, [#allocation20]  }
 0x1ff   : > { %v1130_v50 = vld [vmem:[%s2438_s28] sm:$0xff]  ;;  %v1131_v51 = vld [vmem:[%s2438_s28 + $0x8] sm:$0xff] }
 0x200   : > { %1173 = vmatpush.msra.mxu0 %v1150_v29  ;;  %1193 = vmatpush.msra.mxu1 %v1151_v30  ;;  %v1129_v52 = vld [vmem:[#allocation4] sm:$0xff]  ;;  %s1222_s16 = scalar_lea.hbm %s2709_s19, %s1514_s15  ;;  %s2110_s27 = scalar_lea.hbm %s2709_s19, 32 }
 0x201   : > { %v1162_v53 = vld [vmem:[%s2446_s20] sm:$0x3]  ;;  %s1226_s21 = sshll.u32 %s1222_s16, 4  ;;  %s1227_s21 = int_to_ptr.hbm [resolvable:$true] %s1226_s21 }
 0x202   : > { %1174 = vmatpush.msra.mxu0 %v1148_v31  ;;  %1194 = vmatpush.msra.mxu1 %v1149_v32  ;;  %v1164_v54 = vperm.slane %v1162_v53, 0  ;;  %v1165_v55 = vperm.slane %v1162_v53, 1  ;;  %s2104_s12 = sshra.s32 %s1227_s21, 4  ;;  %s2105_s12 = int_to_ptr.hbm [resolvable:$true] %s2104_s12 }
 0x203   : > { %s2106_s20 = scalar_lea.hbm %s2105_s12, 16  ;;  %p2111_p1 = scmp.lt.s32.totalorder %s2105_s12, %s2709_s19 }
 0x204   : > { %1175 = vmatpush.msra.mxu0 %v1146_v33  ;;  %1195 = vmatpush.msra.mxu1 %v1147_v34  ;;  %p2107_p8 = scmp.ne.s32.totalorder %s2105_s12, %s2106_s20  ;;  %p2112_p9 = scmp.lt.s32.totalorder %s2110_s27, %s2106_s20 }
 0x206   : > { %1176 = vmatpush.msra.mxu0 %v1144_v35  ;;  %1196 = vmatpush.msra.mxu1 %v1145_v36  ;;  %p2108_p4 = pnand %p2107_p8, %p2328_p11  ;;  %p2113_p13 = por %p2112_p9, %p2111_p1 }
 0x208   : > { %1177 = vmatpush.msra.mxu0 %v1142_v37  ;;  %1197 = vmatpush.msra.mxu1 %v1143_v38  ;;  %p2109_p7 = pneg %p2108_p4 }
 0x20a   : > { %1178 = vmatpush.msra.mxu0 %v1140_v39  ;;  %1198 = vmatpush.msra.mxu1 %v1141_v40  ;;  %p2114_p6 = pnand %p2113_p13, %p2109_p7 }
 0x20c   : > { %1179 = vmatpush.msra.mxu0 %v1138_v41  ;;  %1199 = vmatpush.msra.mxu1 %v1139_v43 }
 0x20e   : > { %1180 = vmatpush.msra.mxu0 %v1136_v44  ;;  %1200 = vmatpush.msra.mxu1 %v1137_v45 }
 0x210   : > { %1181 = vmatpush.msra.mxu0 %v1134_v46  ;;  %1201 = vmatpush.msra.mxu1 %v1135_v47 }
 0x212   : > { %1182 = vmatpush.msra.mxu0 %v1132_v48  ;;  %1202 = vmatpush.msra.mxu1 %v1133_v49 }
 0x214   : > { %1183 = vmatpush.msra.mxu0 %v1130_v50  ;;  %1203 = vmatpush.msra.mxu1 %v1131_v51 }
 0x215   : > { %1184 = vmatmul.f32.vlgmr.msra.gmra.mxu0 %v1129_v52  ;;  %1204 = vmatmul.f32.vlgmr.msra.gmra.mxu1 %v1129_v52 }
 0x292   : > { %v1185_v56 = vpop.f32.mrf.mxu0  ;;  %v1205_v57 = vpop.f32.mrf.mxu1 }
 0x293   : > { %v1186_v58 = vadd.f32 %v1185_v56, %v1164_v54  ;;  %v1206_v59 = vadd.f32 %v1205_v57, %v1165_v55 }
 0x295   : > { %1208 = vst [vmem:[%s2448_s13] sm:$0xff] %v1186_v58 }
 0x296   : > { %1209 = vst [vmem:[%s2448_s13 + $0x8] sm:$0xff] %v1206_v59 }
 0x297   : > { %2117 = shalt.err (!%p2114_p6)
}
 0x298   : > { %1535 = dma.vmem_to_hbm [thread:$0]  (%p2328_p11), %s1225_s18, 256, %s1227_s21, %s1211_s14  }
 0x299   : > { %p2711_p2 = pmov %p2706_p0 }
 0x29a   : > { %p2712_p3 = pmov %p2706_p0 }
 0x29b   : > { %2169 = dma.done.wait (%p2711_p2), [#allocation20], 256  }
 0x29c   : > { %2171 = vsyncadd (%p2712_p3), [#allocation20], 4294967040 }
 0x29d PF: > { %s2713_s17 = sld [smem:[#allocation55_spill]]  ;;  %p2715_p5 = scmp.ge.s32.totalorder %s2190_s24, 2 }
 0x29f   : > { %p1566_p0 = pnand %p2715_p5, %p2332_p12 }
 0x2a1   : > { %p1567_p10 = pneg %p1566_p0 }
 0x2a3   : > { %s1272_s3 = sand.u32 1, %s2713_s17  }
 0x2a4   : > { %s1273_s5 = scalar_lea.sflag [#allocation10], %s1272_s3 }
 0x2a5   : > { %2173 = dma.done.wait (%p1567_p10), %s1273_s5, 256  }
 0x2a6   : > { %2175 = vsyncadd (%p1567_p10), %s1273_s5, 4294967040  ;;  %s2716_s24 = sld [smem:[#allocation56_spill]]  ;;  %s2718_s21 = smov %s2182_s22 }
 0x2a7   : > { %s2717_s2 = sld [smem:[#allocation57_spill]]  ;;  %s2719_s22 = smov %s2186_s23 }
 0x2ac   : > { %p34_p11 = scmp.ge.s32.totalorder %s2716_s24, 4  }
 0x2ad   : > { %s2720_s23 = smov %s2717_s2 }
 0x2ae   :  { %36 = sbr.rel (!%p34_p11) target bundleno = 18 (0x12), region = 200 }
 0x2b3   :  { %1279 = vsyncpa [#allocation9], 1 }
 0x2b4   :  { %1281 = vsyncpa [#allocation9 + $0x1], 1 }
 0x2b5   :  { %1282 = vsyncpa [#allocation12], 1 }
 0x2b6   :  { %1283 = vsyncpa [#allocation15], 1 }
 0x2b7   :  { %1284 = vsyncpa [#allocation10], 1 }
 0x2b8   :  { %1286 = vsyncpa [#allocation10 + $0x1], 1 }
 0x2b9   :  { %1287 = vsyncpa [#allocation20], 1 }
 0x2ba   :  { %1288 = vsyncmov [#allocation5] }
 0x2bd   :  { %s1289_s0 = vpop.sfrf %1288 }
 0x2be   :  { %p1505_p12 = scmp.ne.s32.totalorder %s1289_s0, 0 }
 0x2c0   :  { %1293 = shalt.err (%p1505_p12)  }
 0x2c1   :  { %1295 = vsyncmov [#allocation5 + $0x1] }
 0x2c4   :  { %s1296_s29 = vpop.sfrf %1295 }
 0x2c5   :  { %p1506_p8 = scmp.ne.s32.totalorder %s1296_s29, 0 }
 0x2c7   :  { %1300 = shalt.err (%p1506_p8)  }
 0x2c8   :  { %1302 = vsyncmov [#allocation5 + $0x2] }
 0x2cb   :  { %s1303_s15 = vpop.sfrf %1302 }
 0x2cc   :  { %p1507_p4 = scmp.ne.s32.totalorder %s1303_s15, 0 }
 0x2ce   :  { %1307 = shalt.err (%p1507_p4)  }
 0x2cf   :  { %1309 = vsyncmov [#allocation5 + $0x3] }
 0x2d2   :  { %s1310_s1 = vpop.sfrf %1309 }
 0x2d3   :  { %p1508_p7 = scmp.ne.s32.totalorder %s1310_s1, 0 }
 0x2d5   :  { %1314 = shalt.err (%p1508_p7)  }
 0x2d6   :  { %1316 = vsyncmov [#allocation5 + $0x4] }
 0x2d9   :  { %s1317_s6 = vpop.sfrf %1316 }
 0x2da   :  { %p1509_p1 = scmp.ne.s32.totalorder %s1317_s6, 0 }
 0x2dc   :  { %1321 = shalt.err (%p1509_p1)  }
 0x2dd   :  { %1323 = vsyncmov [#allocation5 + $0x5] }
 0x2e0   :  { %s1324_s7 = vpop.sfrf %1323 }
 0x2e1   :  { %p1510_p9 = scmp.ne.s32.totalorder %s1324_s7, 0 }
 0x2e3   :  { %1328 = shalt.err (%p1510_p9)  }
 0x2e4   :  { %1330 = vsyncmov [#allocation5 + $0x6] }
 0x2e7   :  { %s1331_s8 = vpop.sfrf %1330 }
 0x2e8   :  { %p1511_p13 = scmp.ne.s32.totalorder %s1331_s8, 0 }
 0x2ea   :  { %1335 = shalt.err (%p1511_p13)  }
 0x2eb   :  { %1337 = vsyncmov [#allocation5 + $0x7] }
 0x2ee   :  { %s1338_s10 = vpop.sfrf %1337 }
 0x2ef   :  { %p1512_p6 = scmp.ne.s32.totalorder %s1338_s10, 0 }
 0x2f1   :  { %1342 = shalt.err (%p1512_p6)  }

</bundles_post_ra>
